<compile_context>
chip_gen: v5e
topology: v5e:2x2
jax: 0.10.0
libtpu: 0.0.40
codegen_flags: <defaults>
</compile_context>

<pallas_src>
import math

import jax
import jax.numpy as jnp
import numpy as np
from jax.experimental import pallas as pl
from jax.experimental.pallas import tpu as pltpu


# ---------------------------------------------------------------------------
# Tiling helpers
# ---------------------------------------------------------------------------
def _tile(dim, target, align, allow_pad=True):
    """Pick (tile, n_blocks).  Prefers large exact divisors; optionally pads the last block."""
    if dim <= target:
        return dim, 1
    cap = (target // align) * align
    best = 0
    t = cap
    while t >= align:
        if dim % t == 0:
            best = t
            break
        t -= align
    if best and (2 * best >= cap or not allow_pad):
        return best, dim // best
    if allow_pad:
        return cap, pl.cdiv(dim, cap)
    return dim, 1


def _pick_heads(num_heads, target):
    """Head-block size: full H, or a multiple of 8 dividing H (keeps (8,128) tiling legal)."""
    if num_heads <= target:
        return num_heads
    t = (target // 8) * 8
    while t >= 8:
        if num_heads % t == 0:
            return t
        t -= 8
    return num_heads


# ---------------------------------------------------------------------------
# Tiled linear kernel: y = x @ Wt + b   (Wt already (K, N), bias (1, N))
# ---------------------------------------------------------------------------
def _linear_kernel(x_ref, w_ref, b_ref, o_ref, acc_ref):
    @pl.when(pl.program_id(2) == 0)
    def _init():
        acc_ref[...] = jnp.zeros_like(acc_ref)

    acc_ref[...] += jnp.dot(x_ref[...], w_ref[...],
                            preferred_element_type=jnp.float32)

    @pl.when(pl.program_id(2) == pl.num_programs(2) - 1)
    def _finalize():
        o_ref[...] = (acc_ref[...] + b_ref[...].astype(jnp.float32)).astype(o_ref.dtype)


def linear_pallas(x, wt, b, *, tm_target=256, tn_target=256, tk_target=512):
    """y = x @ wt + b.  x: (M, K), wt: (K, N) pre-transposed weight, b: (N,)."""
    M, K = x.shape
    Kw, N = wt.shape
    assert K == Kw
    tm, gm = _tile(M, tm_target, 8, allow_pad=True)      # padded rows are dropped on write
    tn, gn = _tile(N, tn_target, 128, allow_pad=True)    # padded cols are dropped on write
    tk, gk = _tile(K, tk_target, 128, allow_pad=False)   # contraction must divide exactly
    b2 = b.reshape(1, N)
    return pl.pallas_call(
        _linear_kernel,
        out_shape=jax.ShapeDtypeStruct((M, N), x.dtype),
        grid_spec=pltpu.PrefetchScalarGridSpec(
            num_scalar_prefetch=0,
            grid=(gm, gn, gk),
            in_specs=[
                pl.BlockSpec((tm, tk), lambda i, j, k: (i, k)),
                pl.BlockSpec((tk, tn), lambda i, j, k: (k, j)),
                pl.BlockSpec((1, tn), lambda i, j, k: (0, j)),
            ],
            out_specs=pl.BlockSpec((tm, tn), lambda i, j, k: (i, j)),
            scratch_shapes=[pltpu.VMEM((tm, tn), jnp.float32)],
        ),
        compiler_params=pltpu.CompilerParams(
            dimension_semantics=("parallel", "parallel", "arbitrary")),
    )(x, wt, b2)


# ---------------------------------------------------------------------------
# Attention kernel: one (batch element, head block) per grid step, (L, Hb, D) layout.
# q/k/v are sliced directly out of the qkv projection output (no HBM split copies).
# ---------------------------------------------------------------------------
def _attn_kernel(q_ref, k_ref, v_ref, o_ref):
    # Blocks arrive in the qkv-projection's (L, Hb, D) layout; the 1/sqrt(D) scale is
    # already folded into the q projection weights.
    q = pltpu.einshape("lhd->hld", q_ref[...])        # (Hb, L, D), in-VMEM swap (XLU)
    k = pltpu.einshape("lhd->hld", k_ref[...])
    v = pltpu.einshape("lhd->hld", v_ref[...])

    # Batched QK^T contracting on D (no explicit k transpose), f32 accumulation.
    s = jnp.einsum("hqd,hkd->hqk", q, k, preferred_element_type=jnp.float32)
    s = s - jnp.max(s, axis=-1, keepdims=True)
    p = jnp.exp(s)
    denom = jnp.sum(p, axis=-1, keepdims=True)
    inv = pl.reciprocal(denom, approx=True)
    inv = inv * (2.0 - denom * inv)                   # one Newton step -> ~f32 accuracy
    p = (p * inv).astype(v.dtype)

    o = jnp.einsum("hqk,hkd->hqd", p, v, preferred_element_type=jnp.float32)
    o_ref[...] = pltpu.einshape("hld->lhd", o).astype(o_ref.dtype)


def attention_pallas(qkv5, *, hb_target=8):
    """qkv5: (L, N, 3, H, D) view of the fused qkv projection output -> (L, N, H, D)."""
    L, N, three, H, D = qkv5.shape
    assert three == 3
    Hb = _pick_heads(H, hb_target)

    def qkv_spec(which):
        return pl.BlockSpec((L, None, None, Hb, D),
                            lambda n, h, w=which: (0, n, w, h, 0))

    out_spec = pl.BlockSpec((L, None, Hb, D), lambda n, h: (0, n, h, 0))
    return pl.pallas_call(
        _attn_kernel,
        out_shape=jax.ShapeDtypeStruct((L, N, H, D), qkv5.dtype),
        grid_spec=pltpu.PrefetchScalarGridSpec(
            num_scalar_prefetch=0,
            grid=(N, H // Hb),
            in_specs=[qkv_spec(0), qkv_spec(1), qkv_spec(2)],
            out_specs=out_spec,
        ),
        compiler_params=pltpu.CompilerParams(
            dimension_semantics=("parallel", "parallel")),
    )(qkv5, qkv5, qkv5)


# ---------------------------------------------------------------------------
# Parameter preparation (done once, outside the forward path)
# ---------------------------------------------------------------------------
def prepare_params(params, num_heads, embed_dim):
    """Pre-transpose weights and fold the 1/sqrt(D) scale into the q projection."""
    E = embed_dim
    D = E // num_heads
    scale = 1.0 / math.sqrt(D)
    qkv_w = params["qkv_w"]                       # (3E, E) torch nn.Linear layout
    qkv_b = params["qkv_b"]                       # (3E,)
    scale_vec = jnp.concatenate([jnp.full((E,), scale, qkv_w.dtype),
                                 jnp.ones((2 * E,), qkv_w.dtype)])
    return {
        "qkv_wt": jnp.asarray((qkv_w * scale_vec[:, None]).T),   # (E, 3E)
        "qkv_b": qkv_b * scale_vec,                              # (3E,)
        "out_wt": jnp.asarray(params["out_w"].T),                # (E, E)
        "out_b": params["out_b"],                                # (E,)
    }


# ---------------------------------------------------------------------------
# Forward (glue in plain JAX: free reshapes only, no HBM transposes / splits)
# ---------------------------------------------------------------------------
def pyt_multihead_attention_forward(x, prepared, num_heads):
    """x: (L, N, E) seq-first, returns attn_output (L, N, E)."""
    L, N, E = x.shape
    H = num_heads
    D = E // H
    assert D * H == E

    # combined qkv projection (scale already folded into q weights)
    x2 = x.reshape(L * N, E)
    qkv = linear_pallas(x2, prepared["qkv_wt"], prepared["qkv_b"])   # (L*N, 3E)

    # (L*N, 3E) -> (L, N, 3, H, D) is a free view of the contiguous layout; the attention
    # kernel's BlockSpecs pick the q/k/v planes and head blocks directly (no HBM split).
    qkv5 = qkv.reshape(L, N, 3, H, D)
    o = attention_pallas(qkv5)                                       # (L, N, H, D)

    # merge heads: (L, N, H, D) -> (L*N, E) is a free reshape in this layout
    out = linear_pallas(o.reshape(L * N, E), prepared["out_wt"], prepared["out_b"])
    return out.reshape(L, N, E)


# ---------------------------------------------------------------------------
# Deterministic parameter init (mirrors reset_parameters shapes/scheme)
# ---------------------------------------------------------------------------
def init_params(key, embed_dim):
    E = embed_dim

    def xavier_uniform(k, shape, gain=1.0):
        fan_out, fan_in = shape
        bound = gain * math.sqrt(6.0 / (fan_in + fan_out))
        return jax.random.uniform(k, shape, jnp.float32, -bound, bound)

    kq, kk, kv, kbq, ko = jax.random.split(key, 5)
    g = 1.0 / math.sqrt(2.0)
    wq = xavier_uniform(kq, (E, E), gain=g)
    wk = xavier_uniform(kk, (E, E), gain=g)
    wv = xavier_uniform(kv, (E, E), gain=g)
    qkv_w = jnp.concatenate([wq, wk, wv], axis=0)               # (3E, E)
    qkv_b = jax.random.uniform(kbq, (3 * E,), jnp.float32,
                               -1.0 / math.sqrt(E), 1.0 / math.sqrt(E))
    out_w = xavier_uniform(ko, (E, E), gain=1.0)                # (E, E)
    out_b = jnp.zeros((E,), jnp.float32)
    return {"qkv_w": qkv_w, "qkv_b": qkv_b, "out_w": out_w, "out_b": out_b}


# ---------------------------------------------------------------------------
# Pure-JAX reference (uses the original torch-layout params; validates the
# weight pre-transpose and scale folding of the Pallas path too)
# ---------------------------------------------------------------------------
def reference_forward(x, params, num_heads):
    L, N, E = x.shape
    H = num_heads
    D = E // H
    qkv = x.reshape(L * N, E) @ params["qkv_w"].T + params["qkv_b"]
    q, k, v = jnp.split(qkv, 3, axis=-1)
    to_heads = lambda t: t.reshape(L, N * H, D).transpose(1, 0, 2)
    q, k, v = to_heads(q), to_heads(k), to_heads(v)
    s = jnp.einsum("bld,bmd->blm", q * (1.0 / math.sqrt(D)), k)
    p = jax.nn.softmax(s, axis=-1)
    o = jnp.einsum("blm,bmd->bld", p, v)
    o = o.transpose(1, 0, 2).reshape(L * N, E)
    out = o @ params["out_w"].T + params["out_b"]
    return out.reshape(L, N, E)


if __name__ == "__main__":
    # small shapes consistent with the module: seq=16, batch=2, embed=128, heads=4
    L, N, E, H = 16, 2, 128, 4

    key = jax.random.PRNGKey(0)
    kx, kp = jax.random.split(key)
    x = jax.random.normal(kx, (L, N, E), jnp.float32)   # (L, N, E) seq-first
    params = init_params(kp, E)
    prepared = prepare_params(params, H, E)

    fwd = jax.jit(pyt_multihead_attention_forward, static_argnums=(2,))
    out = fwd(x, prepared, H)
    out = jax.block_until_ready(out)

    ref = reference_forward(x, params, H)
    np.testing.assert_allclose(np.asarray(out), np.asarray(ref),
                               rtol=2e-4, atol=2e-4)

    print("KERNEL_OK")
</pallas_src>

<mosaic_0001>
module attributes {stable_mosaic.version = 11 : i64} {
  func.func @_linear_kernel(%arg0: i32, %arg1: i32, %arg2: i32, %arg3: memref<32x128xf32, #tpu.memory_space<vmem>>, %arg4: memref<128x128xf32, #tpu.memory_space<vmem>>, %arg5: memref<1x128xf32, #tpu.memory_space<vmem>>, %arg6: memref<32x128xf32, #tpu.memory_space<vmem>>, %arg7: memref<32x128xf32, #tpu.memory_space<vmem>>) attributes {dimension_semantics = [#tpu.dimension_semantics<parallel>, #tpu.dimension_semantics<parallel>, #tpu.dimension_semantics<arbitrary>], iteration_bounds = array<i64: 1, 3, 1>, scalar_prefetch = 0 : i64, scratch_operands = 1 : i64, tpu.core_type = #tpu.core_type<tc>, window_params = [{transform_indices = @transform_0, window_bounds = array<i64: 32, 128>}, {transform_indices = @transform_1, window_bounds = array<i64: 128, 128>}, {transform_indices = @transform_2, window_bounds = array<i64: 1, 128>}, {transform_indices = @transform_3, window_bounds = array<i64: 32, 128>}]} {
    %c0_i32 = arith.constant 0 : i32
    %0 = arith.cmpi eq, %arg2, %c0_i32 : i32
    %1 = arith.extui %0 : i1 to i32
    %c0_i32_0 = arith.constant 0 : i32
    %2 = arith.cmpi ne, %1, %c0_i32_0 : i32
    scf.if %2 {
      %cst_10 = arith.constant 0.000000e+00 : f32
      %12 = vector.broadcast %cst_10 : f32 to vector<32x128xf32>
      %c0_11 = arith.constant 0 : index
      %c0_12 = arith.constant 0 : index
      %13 = vector.load %arg7[%c0_11, %c0_12] : memref<32x128xf32, #tpu.memory_space<vmem>>, vector<32x128xf32>
      tpu.vector_store %arg7[%c0_11, %c0_12], %12 {strides = array<i32>} : memref<32x128xf32, #tpu.memory_space<vmem>>, vector<32x128xf32>,
    } else {
    }
    %c0 = arith.constant 0 : index
    %c0_1 = arith.constant 0 : index
    %3 = vector.load %arg7[%c0, %c0_1] : memref<32x128xf32, #tpu.memory_space<vmem>>, vector<32x128xf32>
    %c0_2 = arith.constant 0 : index
    %c0_3 = arith.constant 0 : index
    %4 = vector.load %arg3[%c0_2, %c0_3] : memref<32x128xf32, #tpu.memory_space<vmem>>, vector<32x128xf32>
    %c0_4 = arith.constant 0 : index
    %c0_5 = arith.constant 0 : index
    %5 = vector.load %arg4[%c0_4, %c0_5] : memref<128x128xf32, #tpu.memory_space<vmem>>, vector<128x128xf32>
    %cst = arith.constant dense<0.000000e+00> : vector<32x128xf32>
    %6 = tpu.matmul %4, %5, %cst {dimension_numbers = #tpu.dot_dimension_numbers<[1], [0], [0], [1], [0, 0, 1, 1], [], []>} : vector<32x128xf32>, vector<128x128xf32>, vector<32x128xf32> -> vector<32x128xf32>
    %7 = arith.addf %3, %6 : vector<32x128xf32>
    %c0_6 = arith.constant 0 : index
    %c0_7 = arith.constant 0 : index
    %8 = vector.load %arg7[%c0_6, %c0_7] : memref<32x128xf32, #tpu.memory_space<vmem>>, vector<32x128xf32>
    tpu.vector_store %arg7[%c0_6, %c0_7], %7 {strides = array<i32>} : memref<32x128xf32, #tpu.memory_space<vmem>>, vector<32x128xf32>,
    %c0_i32_8 = arith.constant 0 : i32
    %9 = arith.cmpi eq, %arg2, %c0_i32_8 : i32
    %10 = arith.extui %9 : i1 to i32
    %c0_i32_9 = arith.constant 0 : i32
    %11 = arith.cmpi ne, %10, %c0_i32_9 : i32
    scf.if %11 {
      %c0_10 = arith.constant 0 : index
      %c0_11 = arith.constant 0 : index
      %12 = vector.load %arg7[%c0_10, %c0_11] : memref<32x128xf32, #tpu.memory_space<vmem>>, vector<32x128xf32>
      %c0_12 = arith.constant 0 : index
      %c0_13 = arith.constant 0 : index
      %13 = vector.load %arg5[%c0_12, %c0_13] : memref<1x128xf32, #tpu.memory_space<vmem>>, vector<1x128xf32>
      %14 = vector.broadcast %13 : vector<1x128xf32> to vector<32x128xf32>
      %15 = arith.addf %12, %14 : vector<32x128xf32>
      %c0_14 = arith.constant 0 : index
      %c0_15 = arith.constant 0 : index
      %16 = vector.load %arg6[%c0_14, %c0_15] : memref<32x128xf32, #tpu.memory_space<vmem>>, vector<32x128xf32>
      tpu.vector_store %arg6[%c0_14, %c0_15], %15 {strides = array<i32>} : memref<32x128xf32, #tpu.memory_space<vmem>>, vector<32x128xf32>,
    } else {
    }
    return
  }
  func.func @transform_0(%arg0: i32, %arg1: i32, %arg2: i32) -> (i32, i32) {
    %c0_i32 = arith.constant 0 : i32
    return %arg0, %arg2 : i32, i32
  }
  func.func @transform_1(%arg0: i32, %arg1: i32, %arg2: i32) -> (i32, i32) {
    %c0_i32 = arith.constant 0 : i32
    return %arg2, %arg1 : i32, i32
  }
  func.func @transform_2(%arg0: i32, %arg1: i32, %arg2: i32) -> (i32, i32) {
    %c0_i32 = arith.constant 0 : i32
    %c0_i32_0 = arith.constant 0 : i32
    return %c0_i32, %arg1 : i32, i32
  }
  func.func @transform_3(%arg0: i32, %arg1: i32, %arg2: i32) -> (i32, i32) {
    %c0_i32 = arith.constant 0 : i32
    return %arg0, %arg1 : i32, i32
  }
}

module attributes {stable_mosaic.version = 11 : i64} {
  func.func @_attn_kernel(%arg0: i32, %arg1: i32, %arg2: memref<16x1x1x4x32xf32, #tpu.memory_space<vmem>>, %arg3: memref<16x1x1x4x32xf32, #tpu.memory_space<vmem>>, %arg4: memref<16x1x1x4x32xf32, #tpu.memory_space<vmem>>, %arg5: memref<16x1x4x32xf32, #tpu.memory_space<vmem>>) attributes {dimension_semantics = [#tpu.dimension_semantics<parallel>, #tpu.dimension_semantics<parallel>], iteration_bounds = array<i64: 2, 1>, scalar_prefetch = 0 : i64, scratch_operands = 0 : i64, tpu.core_type = #tpu.core_type<tc>, window_params = [{transform_indices = @transform_0, window_bounds = array<i64: 16, 1, 1, 4, 32>}, {transform_indices = @transform_1, window_bounds = array<i64: 16, 1, 1, 4, 32>}, {transform_indices = @transform_2, window_bounds = array<i64: 16, 1, 1, 4, 32>}, {transform_indices = @transform_3, window_bounds = array<i64: 16, 1, 4, 32>}]} {
    %c0 = arith.constant 0 : index
    %c0_0 = arith.constant 0 : index
    %c0_1 = arith.constant 0 : index
    %c0_2 = arith.constant 0 : index
    %c0_3 = arith.constant 0 : index
    %0 = vector.load %arg2[%c0, %c0_0, %c0_1, %c0_2, %c0_3] : memref<16x1x1x4x32xf32, #tpu.memory_space<vmem>>, vector<16x1x1x4x32xf32>
    %1 = vector.shape_cast %0 : vector<16x1x1x4x32xf32> to vector<16x4x32xf32>
    %2 = tpu.transpose %1, [1, 0, 2] : vector<16x4x32xf32> -> vector<4x16x32xf32>
    %c0_4 = arith.constant 0 : index
    %c0_5 = arith.constant 0 : index
    %c0_6 = arith.constant 0 : index
    %c0_7 = arith.constant 0 : index
    %c0_8 = arith.constant 0 : index
    %3 = vector.load %arg3[%c0_4, %c0_5, %c0_6, %c0_7, %c0_8] : memref<16x1x1x4x32xf32, #tpu.memory_space<vmem>>, vector<16x1x1x4x32xf32>
    %4 = vector.shape_cast %3 : vector<16x1x1x4x32xf32> to vector<16x4x32xf32>
    %5 = tpu.transpose %4, [1, 0, 2] : vector<16x4x32xf32> -> vector<4x16x32xf32>
    %c0_9 = arith.constant 0 : index
    %c0_10 = arith.constant 0 : index
    %c0_11 = arith.constant 0 : index
    %c0_12 = arith.constant 0 : index
    %c0_13 = arith.constant 0 : index
    %6 = vector.load %arg4[%c0_9, %c0_10, %c0_11, %c0_12, %c0_13] : memref<16x1x1x4x32xf32, #tpu.memory_space<vmem>>, vector<16x1x1x4x32xf32>
    %7 = vector.shape_cast %6 : vector<16x1x1x4x32xf32> to vector<16x4x32xf32>
    %8 = tpu.transpose %7, [1, 0, 2] : vector<16x4x32xf32> -> vector<4x16x32xf32>
    "tpu.trace_start"() <{level = 10 : i32, message = "hqd,hkd->hqk"}> : () -> ()
    %cst = arith.constant dense<0.000000e+00> : vector<4x16x16xf32>
    %9 = tpu.matmul %2, %5, %cst {dimension_numbers = #tpu.dot_dimension_numbers<[2], [2], [1], [1], [0, 0, 0, 1, 1, 1], [0], [0]>} : vector<4x16x32xf32>, vector<4x16x32xf32>, vector<4x16x16xf32> -> vector<4x16x16xf32>
    "tpu.trace_stop"() : () -> ()
    %cst_14 = arith.constant dense<0xFF800000> : vector<4x16xf32>
    %10 = vector.multi_reduction <maximumf>, %9, %cst_14 [2] : vector<4x16x16xf32> to vector<4x16xf32>
    %11 = vector.shape_cast %10 : vector<4x16xf32> to vector<4x16x1xf32>
    %12 = vector.broadcast %11 : vector<4x16x1xf32> to vector<4x16x16xf32>
    %13 = arith.subf %9, %12 : vector<4x16x16xf32>
    %14 = math.exp %13 : vector<4x16x16xf32>
    %cst_15 = arith.constant dense<0.000000e+00> : vector<4x16xf32>
    %15 = vector.multi_reduction <add>, %14, %cst_15 [2] : vector<4x16x16xf32> to vector<4x16xf32>
    %16 = vector.shape_cast %15 : vector<4x16xf32> to vector<4x16x1xf32>
    %17 = tpu.reciprocal %16 {approx = true} : vector<4x16x1xf32> -> vector<4x16x1xf32>
    %18 = arith.mulf %16, %17 : vector<4x16x1xf32>
    %cst_16 = arith.constant 2.000000e+00 : f32
    %19 = vector.broadcast %cst_16 : f32 to vector<4x16x1xf32>
    %20 = arith.subf %19, %18 : vector<4x16x1xf32>
    %21 = arith.mulf %17, %20 : vector<4x16x1xf32>
    %22 = vector.broadcast %21 : vector<4x16x1xf32> to vector<4x16x16xf32>
    %23 = arith.mulf %14, %22 : vector<4x16x16xf32>
    "tpu.trace_start"() <{level = 10 : i32, message = "hqk,hkd->hqd"}> : () -> ()
    %cst_17 = arith.constant dense<0.000000e+00> : vector<4x16x32xf32>
    %24 = tpu.matmul %23, %8, %cst_17 {dimension_numbers = #tpu.dot_dimension_numbers<[2], [1], [1], [2], [0, 0, 0, 1, 1, 2], [0], [0]>} : vector<4x16x16xf32>, vector<4x16x32xf32>, vector<4x16x32xf32> -> vector<4x16x32xf32>
    "tpu.trace_stop"() : () -> ()
    %25 = tpu.transpose %24, [1, 0, 2] : vector<4x16x32xf32> -> vector<16x4x32xf32>
    %c0_18 = arith.constant 0 : index
    %c0_19 = arith.constant 0 : index
    %c0_20 = arith.constant 0 : index
    %c0_21 = arith.constant 0 : index
    %26 = vector.load %arg5[%c0_18, %c0_19, %c0_20, %c0_21] : memref<16x1x4x32xf32, #tpu.memory_space<vmem>>, vector<16x1x4x32xf32>
    %27 = vector.shape_cast %26 : vector<16x1x4x32xf32> to vector<16x4x32xf32>
    %28 = vector.shape_cast %25 : vector<16x4x32xf32> to vector<16x1x4x32xf32>
    tpu.vector_store %arg5[%c0_18, %c0_19, %c0_20, %c0_21], %28 {strides = array<i32>} : memref<16x1x4x32xf32, #tpu.memory_space<vmem>>, vector<16x1x4x32xf32>,
    return
  }
  func.func @transform_0(%arg0: i32, %arg1: i32) -> (i32, i32, i32, i32, i32) {
    %c0_i32 = arith.constant 0 : i32
    %c0_i32_0 = arith.constant 0 : i32
    %c0_i32_1 = arith.constant 0 : i32
    %c0_i32_2 = arith.constant 0 : i32
    return %c0_i32, %arg0, %c0_i32_0, %arg1, %c0_i32_1 : i32, i32, i32, i32, i32
  }
  func.func @transform_1(%arg0: i32, %arg1: i32) -> (i32, i32, i32, i32, i32) {
    %c0_i32 = arith.constant 0 : i32
    %c1_i32 = arith.constant 1 : i32
    %c0_i32_0 = arith.constant 0 : i32
    %c0_i32_1 = arith.constant 0 : i32
    return %c0_i32, %arg0, %c1_i32, %arg1, %c0_i32_0 : i32, i32, i32, i32, i32
  }
  func.func @transform_2(%arg0: i32, %arg1: i32) -> (i32, i32, i32, i32, i32) {
    %c0_i32 = arith.constant 0 : i32
    %c2_i32 = arith.constant 2 : i32
    %c0_i32_0 = arith.constant 0 : i32
    %c0_i32_1 = arith.constant 0 : i32
    return %c0_i32, %arg0, %c2_i32, %arg1, %c0_i32_0 : i32, i32, i32, i32, i32
  }
  func.func @transform_3(%arg0: i32, %arg1: i32) -> (i32, i32, i32, i32) {
    %c0_i32 = arith.constant 0 : i32
    %c0_i32_0 = arith.constant 0 : i32
    %c0_i32_1 = arith.constant 0 : i32
    return %c0_i32, %arg0, %arg1, %c0_i32_0 : i32, i32, i32, i32
  }
}

module attributes {stable_mosaic.version = 11 : i64} {
  func.func @_linear_kernel(%arg0: i32, %arg1: i32, %arg2: i32, %arg3: memref<32x128xf32, #tpu.memory_space<vmem>>, %arg4: memref<128x128xf32, #tpu.memory_space<vmem>>, %arg5: memref<1x128xf32, #tpu.memory_space<vmem>>, %arg6: memref<32x128xf32, #tpu.memory_space<vmem>>, %arg7: memref<32x128xf32, #tpu.memory_space<vmem>>) attributes {dimension_semantics = [#tpu.dimension_semantics<parallel>, #tpu.dimension_semantics<parallel>, #tpu.dimension_semantics<arbitrary>], iteration_bounds = array<i64: 1, 1, 1>, scalar_prefetch = 0 : i64, scratch_operands = 1 : i64, tpu.core_type = #tpu.core_type<tc>, window_params = [{transform_indices = @transform_0, window_bounds = array<i64: 32, 128>}, {transform_indices = @transform_1, window_bounds = array<i64: 128, 128>}, {transform_indices = @transform_2, window_bounds = array<i64: 1, 128>}, {transform_indices = @transform_3, window_bounds = array<i64: 32, 128>}]} {
    %c0_i32 = arith.constant 0 : i32
    %0 = arith.cmpi eq, %arg2, %c0_i32 : i32
    %1 = arith.extui %0 : i1 to i32
    %c0_i32_0 = arith.constant 0 : i32
    %2 = arith.cmpi ne, %1, %c0_i32_0 : i32
    scf.if %2 {
      %cst_10 = arith.constant 0.000000e+00 : f32
      %12 = vector.broadcast %cst_10 : f32 to vector<32x128xf32>
      %c0_11 = arith.constant 0 : index
      %c0_12 = arith.constant 0 : index
      %13 = vector.load %arg7[%c0_11, %c0_12] : memref<32x128xf32, #tpu.memory_space<vmem>>, vector<32x128xf32>
      tpu.vector_store %arg7[%c0_11, %c0_12], %12 {strides = array<i32>} : memref<32x128xf32, #tpu.memory_space<vmem>>, vector<32x128xf32>,
    } else {
    }
    %c0 = arith.constant 0 : index
    %c0_1 = arith.constant 0 : index
    %3 = vector.load %arg7[%c0, %c0_1] : memref<32x128xf32, #tpu.memory_space<vmem>>, vector<32x128xf32>
    %c0_2 = arith.constant 0 : index
    %c0_3 = arith.constant 0 : index
    %4 = vector.load %arg3[%c0_2, %c0_3] : memref<32x128xf32, #tpu.memory_space<vmem>>, vector<32x128xf32>
    %c0_4 = arith.constant 0 : index
    %c0_5 = arith.constant 0 : index
    %5 = vector.load %arg4[%c0_4, %c0_5] : memref<128x128xf32, #tpu.memory_space<vmem>>, vector<128x128xf32>
    %cst = arith.constant dense<0.000000e+00> : vector<32x128xf32>
    %6 = tpu.matmul %4, %5, %cst {dimension_numbers = #tpu.dot_dimension_numbers<[1], [0], [0], [1], [0, 0, 1, 1], [], []>} : vector<32x128xf32>, vector<128x128xf32>, vector<32x128xf32> -> vector<32x128xf32>
    %7 = arith.addf %3, %6 : vector<32x128xf32>
    %c0_6 = arith.constant 0 : index
    %c0_7 = arith.constant 0 : index
    %8 = vector.load %arg7[%c0_6, %c0_7] : memref<32x128xf32, #tpu.memory_space<vmem>>, vector<32x128xf32>
    tpu.vector_store %arg7[%c0_6, %c0_7], %7 {strides = array<i32>} : memref<32x128xf32, #tpu.memory_space<vmem>>, vector<32x128xf32>,
    %c0_i32_8 = arith.constant 0 : i32
    %9 = arith.cmpi eq, %arg2, %c0_i32_8 : i32
    %10 = arith.extui %9 : i1 to i32
    %c0_i32_9 = arith.constant 0 : i32
    %11 = arith.cmpi ne, %10, %c0_i32_9 : i32
    scf.if %11 {
      %c0_10 = arith.constant 0 : index
      %c0_11 = arith.constant 0 : index
      %12 = vector.load %arg7[%c0_10, %c0_11] : memref<32x128xf32, #tpu.memory_space<vmem>>, vector<32x128xf32>
      %c0_12 = arith.constant 0 : index
      %c0_13 = arith.constant 0 : index
      %13 = vector.load %arg5[%c0_12, %c0_13] : memref<1x128xf32, #tpu.memory_space<vmem>>, vector<1x128xf32>
      %14 = vector.broadcast %13 : vector<1x128xf32> to vector<32x128xf32>
      %15 = arith.addf %12, %14 : vector<32x128xf32>
      %c0_14 = arith.constant 0 : index
      %c0_15 = arith.constant 0 : index
      %16 = vector.load %arg6[%c0_14, %c0_15] : memref<32x128xf32, #tpu.memory_space<vmem>>, vector<32x128xf32>
      tpu.vector_store %arg6[%c0_14, %c0_15], %15 {strides = array<i32>} : memref<32x128xf32, #tpu.memory_space<vmem>>, vector<32x128xf32>,
    } else {
    }
    return
  }
  func.func @transform_0(%arg0: i32, %arg1: i32, %arg2: i32) -> (i32, i32) {
    %c0_i32 = arith.constant 0 : i32
    return %arg0, %arg2 : i32, i32
  }
  func.func @transform_1(%arg0: i32, %arg1: i32, %arg2: i32) -> (i32, i32) {
    %c0_i32 = arith.constant 0 : i32
    return %arg2, %arg1 : i32, i32
  }
  func.func @transform_2(%arg0: i32, %arg1: i32, %arg2: i32) -> (i32, i32) {
    %c0_i32 = arith.constant 0 : i32
    %c0_i32_0 = arith.constant 0 : i32
    return %c0_i32, %arg1 : i32, i32
  }
  func.func @transform_3(%arg0: i32, %arg1: i32, %arg2: i32) -> (i32, i32) {
    %c0_i32 = arith.constant 0 : i32
    return %arg0, %arg1 : i32, i32
  }
}

</mosaic_0001>

<bundles_post_ra>
// kernel: pyt_multihead_attention_forward.3
= control target key start
LH: loop header
LB: loop body
LE: loop exit
PB: predicated region body
PF: predicated region fallthrough
CT: control target
= control target key end

     0   :  { %8 = vsyncpa [#allocation4], 0  ;;  %s942_s0 = inlined_call_operand.hbm [shape: f32[32,128], index: 0, kind: input, shape index: {}]   ;;  %s943_s1 = inlined_call_operand.hbm [shape: f32[128,384], index: 1, kind: input, shape index: {}]   ;;  %s944_s2 = inlined_call_operand.vmem [shape: f32[1,384], index: 2, kind: input, shape index: {}]   ;;  %s945_s3 = inlined_call_operand.vmem [shape: f32[32,384], index: 3, kind: output, shape index: {}]  }
   0x1   :  { %9 = vsyncpa [#allocation6], 0 }
   0x2   :  { %11 = vsyncpa [#allocation6 + $0x1], 0  ;;  %s777_s12 = smov 0   ;;  %s779_s13 = smov 0  }
   0x3   :  { %s781_s14 = smov 0   ;;  %s783_s15 = smov 0  }
   0x4   :  { %s785_s16 = smov 0   ;;  %s787_s17 = smov 0  }
   0x5 LB: > { %s504_s18 = sadd.s32 4294967295, %s751_s17   ;;  %p86_p0 = scmp.ne.s32.totalorder %s735_s13, %s731_s12  ;;  %s751_s17 = sphi %s787_s17, %s17_s17   ;;  %s747_s16 = sphi %s785_s16, %s956_s16   ;;  %s743_s15 = sphi %s783_s15, %s955_s15   ;;  %s739_s14 = sphi %s781_s14, %s954_s14   ;;  %s735_s13 = sphi %s779_s13, %s953_s13   ;;  %s731_s12 = sphi %s777_s12, %s952_s12  }
   0x6   : > { %p807_p1 = scmp.eq.s32.totalorder %s504_s18, 0  ;;  %p811_p2 = scmp.eq.s32.totalorder %s504_s18, 2 }
   0x7   : > { %p506_p3 = scmp.ge.s32.totalorder %s751_s17, 1  ;;  %p151_p4 = scmp.lt.s32.totalorder %s751_s17, 4 }
   0x8   : > { %p819_p5 = por %p807_p1, %p86_p0  ;;  %s166_s25 = sshll.u32 %s942_s0, 4  ;;  %s167_s25 = int_to_ptr.hbm [resolvable:$true] %s166_s25 }
   0x9   : > { %p823_p6 = pnand %p506_p3, %p151_p4  ;;  %s753_s26 = smov [#allocation3]  }
   0xa   : > { %s168_s27 = sshll.u32 %s753_s26, 4  ;;  %s754_s28 = smov 128   ;;  %s169_s27 = int_to_ptr.vmem [resolvable:$true] %s168_s27 }
   0xb   : > { %p573_p7 = pneg %p823_p6  ;;  %s755_s29 = smov 8  }
   0xc   : > { %s32_s30 = sadd.s32 1, %s747_s16  ;;  %s73_s4 = sadd.s32 1, %s739_s14 }
   0xd   : > { %p574_p8 = pnand %p573_p7, %p807_p1  ;;  %p34_p9 = scmp.ge.s32.totalorder %s32_s30, 3 }
   0xe   : > { %p80_p10 = scmp.ne.s32.totalorder %s739_s14, %s735_s13  ;;  %p81_p11 = scmp.eq.s32.totalorder %s751_s17, 0 }
   0xf   : > { %576 = dma.hbm_to_vmem [thread:$0]  (!%p574_p8), %s167_s25, 512, %s169_s27, [#allocation4], %s754_s28, %s754_s28, %s755_s29  }
  0x10   : > { %p582_p12 = scmp.lt.s32.totalorder %s751_s17, 3  ;;  %s958_s30 = smov (%p34_p9, %s32_s30), 0 }
  0x11   : > { %p845_p13 = por %p81_p11, %p80_p10  ;;  %p851_p0 = por %p811_p2, %p80_p10 }
  0x12   : > { %s69_s7 = ssub.s32 %s747_s16, %s958_s30  ;;  %s182_s8 = sand.u32 1, %s739_s14  }
  0x13   : > { %p71_p3 = scmp.eq.s32.totalorder %s69_s7, 0  ;;  %s509_s9 = sshll.u32 %s182_s8, 7 }
  0x14   : > { %s510_s10 = sshll.u32 %s747_s16, 3  ;;  %s186_s25 = scalar_lea.vmem [#allocation5], %s509_s9 }
  0x15   : > { %s860_s11 = scalar_select %p71_p3, %s739_s14, %s73_s4  }
  0x16   : > { %s193_s23 = scalar_lea.hbm %s943_s1, %s510_s10  ;;  %s196_s26 = sshll.u32 %s186_s25, 4  ;;  %s197_s26 = int_to_ptr.vmem [resolvable:$true] %s196_s26 }
  0x17   : > { %s194_s24 = sshll.u32 %s193_s23, 4  ;;  %p578_p2 = pnand %p582_p12, %p845_p13  ;;  %s195_s24 = int_to_ptr.hbm [resolvable:$true] %s194_s24 }
  0x18   : > { %s183_s20 = scalar_lea.sflag [#allocation6], %s182_s8  ;;  %s756_s27 = smov 384  }
  0x19   : > { %580 = dma.hbm_to_vmem [thread:$0]  (!%p578_p2), %s195_s24, 2048, %s197_s26, %s183_s20, %s756_s27, %s754_s28, %s755_s29  }
  0x1a   : > { %214 = sbr.rel (%p823_p6) target bundleno = 212 (0xd4), region = 32 }
  0x1f   : > { %722 = dma.done.wait (%p807_p1), [#allocation4], 512  }
  0x20   : > { %724 = vsyncadd (%p807_p1), [#allocation4], 4294966784  ;;  %s878_s4 = sand.u32 1, %s735_s13  }
  0x21   : > { %s513_s5 = sshll.u32 %s878_s4, 7  ;;  %s222_s7 = scalar_lea.sflag [#allocation6], %s878_s4 }
  0x22   : > { %s882_s8 = scalar_lea.vmem [#allocation5], %s513_s5 }
  0x23   : > { %726 = dma.done.wait (%p819_p5), %s222_s7, 2048  }
  0x24   : > { %728 = vsyncadd (%p819_p5), %s222_s7, 4294965248  ;;  %p253_p1 = scmp.lt.s32.totalorder %s743_s15, 2  ;;  %v288_v0 = vld [vmem:[%s882_s8 + $0x78] sm:$0xff]  ;;  %v287_v1 = vld [vmem:[%s882_s8 + $0x70] sm:$0xff]  ;;  %s514_s29 = sshll.u32 %s878_s4, 5 }
  0x25   : > { %520 = vmatpush.msra.mxu2 %v288_v0  ;;  %521 = vmatpush.msra.mxu3 %v288_v0  ;;  %v286_v2 = vld [vmem:[%s882_s8 + $0x68] sm:$0xff]  ;;  %v285_v3 = vld [vmem:[%s882_s8 + $0x60] sm:$0xff]  ;;  %v284_v4 = vld [vmem:[%s882_s8 + $0x58] sm:$0xff]  ;;  %s250_s12 = scalar_lea.vmem [#allocation7], %s514_s29  ;;  %s516_s18 = sshll.u32 (%p851_p0), %s743_s15, 3 }
  0x26   : > { %s892_s19 = scalar_select %p253_p1, %s743_s15, 2  ;;  %289 = vmatpush.msra.mxu0 %v288_v0  ;;  %519 = vmatpush.msra.mxu1 %v288_v0  ;;  %v283_v5 = vld [vmem:[%s882_s8 + $0x50] sm:$0xff]  ;;  %v282_v6 = vld [vmem:[%s882_s8 + $0x48] sm:$0xff]  ;;  %v281_v7 = vld [vmem:[%s882_s8 + $0x40] sm:$0xff] }
  0x27   : > { %523 = vmatpush.msra.mxu2 %v287_v1  ;;  %524 = vmatpush.msra.mxu3 %v287_v1  ;;  %v280_v8 = vld [vmem:[%s882_s8 + $0x38] sm:$0xff]  ;;  %v279_v9 = vld [vmem:[%s882_s8 + $0x30] sm:$0xff]  ;;  %v278_v10 = vld [vmem:[%s882_s8 + $0x28] sm:$0xff]  ;;  %s356_s25 = scalar_lea.vmem (%p851_p0), %s945_s3, %s516_s18 }
  0x28   : > { %290 = vmatpush.msra.mxu0 %v287_v1  ;;  %522 = vmatpush.msra.mxu1 %v287_v1  ;;  %s255_s28 = scalar_lea.vmem %s944_s2, %s892_s19  ;;  %v277_v11 = vld [vmem:[%s882_s8 + $0x20] sm:$0xff]  ;;  %v276_v12 = vld [vmem:[%s882_s8 + $0x18] sm:$0xff]  ;;  %v275_v13 = vld [vmem:[%s882_s8 + $0x10] sm:$0xff] }
  0x29   : > { %526 = vmatpush.msra.mxu2 %v286_v2  ;;  %527 = vmatpush.msra.mxu3 %v286_v2  ;;  %v274_v14 = vld [vmem:[%s882_s8 + $0x8] sm:$0xff]  ;;  %v273_v15 = vld [vmem:[%s882_s8] sm:$0xff]  ;;  %v271_v16 = vld [vmem:[#allocation3 + $0x10] sm:$0xff] }
  0x2a   : > { %291 = vmatpush.msra.mxu0 %v286_v2  ;;  %525 = vmatpush.msra.mxu1 %v286_v2  ;;  %v272_v17 = vld [vmem:[#allocation3 + $0x18] sm:$0xff]  ;;  %v269_v18 = vld [vmem:[#allocation3] sm:$0xff]  ;;  %v270_v19 = vld [vmem:[#allocation3 + $0x8] sm:$0xff] }
  0x2b   : > { %529 = vmatpush.msra.mxu2 %v285_v3  ;;  %530 = vmatpush.msra.mxu3 %v285_v3  ;;  %v636_v20 = vld [vmem:[%s255_s28] ss:$0 sm:$0xff] }
  0x2c   : > { %292 = vmatpush.msra.mxu0 %v285_v3  ;;  %528 = vmatpush.msra.mxu1 %v285_v3 }
  0x2d   : > { %532 = vmatpush.msra.mxu2 %v284_v4  ;;  %533 = vmatpush.msra.mxu3 %v284_v4 }
  0x2e   : > { %293 = vmatpush.msra.mxu0 %v284_v4  ;;  %531 = vmatpush.msra.mxu1 %v284_v4 }
  0x2f   : > { %535 = vmatpush.msra.mxu2 %v283_v5  ;;  %536 = vmatpush.msra.mxu3 %v283_v5 }
  0x30   : > { %294 = vmatpush.msra.mxu0 %v283_v5  ;;  %534 = vmatpush.msra.mxu1 %v283_v5 }
  0x31   : > { %538 = vmatpush.msra.mxu2 %v282_v6  ;;  %539 = vmatpush.msra.mxu3 %v282_v6 }
  0x32   : > { %295 = vmatpush.msra.mxu0 %v282_v6  ;;  %537 = vmatpush.msra.mxu1 %v282_v6 }
  0x33   : > { %541 = vmatpush.msra.mxu2 %v281_v7  ;;  %542 = vmatpush.msra.mxu3 %v281_v7 }
  0x34   : > { %296 = vmatpush.msra.mxu0 %v281_v7  ;;  %540 = vmatpush.msra.mxu1 %v281_v7 }
  0x35   : > { %544 = vmatpush.msra.mxu2 %v280_v8  ;;  %545 = vmatpush.msra.mxu3 %v280_v8 }
  0x36   : > { %297 = vmatpush.msra.mxu0 %v280_v8  ;;  %543 = vmatpush.msra.mxu1 %v280_v8 }
  0x37   : > { %547 = vmatpush.msra.mxu2 %v279_v9  ;;  %548 = vmatpush.msra.mxu3 %v279_v9 }
  0x38   : > { %298 = vmatpush.msra.mxu0 %v279_v9  ;;  %546 = vmatpush.msra.mxu1 %v279_v9 }
  0x39   : > { %550 = vmatpush.msra.mxu2 %v278_v10  ;;  %551 = vmatpush.msra.mxu3 %v278_v10 }
  0x3a   : > { %299 = vmatpush.msra.mxu0 %v278_v10  ;;  %549 = vmatpush.msra.mxu1 %v278_v10 }
  0x3b   : > { %553 = vmatpush.msra.mxu2 %v277_v11  ;;  %554 = vmatpush.msra.mxu3 %v277_v11 }
  0x3c   : > { %300 = vmatpush.msra.mxu0 %v277_v11  ;;  %552 = vmatpush.msra.mxu1 %v277_v11 }
  0x3d   : > { %556 = vmatpush.msra.mxu2 %v276_v12  ;;  %557 = vmatpush.msra.mxu3 %v276_v12 }
  0x3e   : > { %301 = vmatpush.msra.mxu0 %v276_v12  ;;  %555 = vmatpush.msra.mxu1 %v276_v12 }
  0x3f   : > { %559 = vmatpush.msra.mxu2 %v275_v13  ;;  %560 = vmatpush.msra.mxu3 %v275_v13 }
  0x40   : > { %302 = vmatpush.msra.mxu0 %v275_v13  ;;  %558 = vmatpush.msra.mxu1 %v275_v13 }
  0x41   : > { %562 = vmatpush.msra.mxu2 %v274_v14  ;;  %563 = vmatpush.msra.mxu3 %v274_v14 }
  0x42   : > { %303 = vmatpush.msra.mxu0 %v274_v14  ;;  %561 = vmatpush.msra.mxu1 %v274_v14 }
  0x43   : > { %565 = vmatpush.msra.mxu2 %v273_v15  ;;  %566 = vmatpush.msra.mxu3 %v273_v15 }
  0x44   : > { %311 = vmatmul.f32.vlgmr.msra.gmra.mxu2 %v271_v16  ;;  %314 = vmatmul.f32.vlgmr.msra.gmra.mxu3 %v272_v17 }
  0x45   : > { %304 = vmatpush.msra.mxu0 %v273_v15  ;;  %564 = vmatpush.msra.mxu1 %v273_v15 }
  0x46   : > { %305 = vmatmul.f32.vlgmr.msra.gmra.mxu0 %v269_v18  ;;  %308 = vmatmul.f32.vlgmr.msra.gmra.mxu1 %v270_v19 }
  0xc3   : > { %v306_v21 = vpop.f32.mrf.mxu0  ;;  %v309_v22 = vpop.f32.mrf.mxu1 }
  0xc4   : > { %v337_v23 = vadd.f32 %v636_v20, %v306_v21  ;;  %v338_v24 = vadd.f32 %v636_v20, %v309_v22 }
  0xc6   : > { %341 = vst [vmem:[%s250_s12] sm:$0xff] %v337_v23 }
  0xc7   : > { %342 = vst [vmem:[%s250_s12 + $0x8] sm:$0xff] %v338_v24  ;;  %v312_v25 = vpop.f32.mrf.mxu2  ;;  %v315_v26 = vpop.f32.mrf.mxu3  ;;  %351 = sbr.rel (!%p851_p0) target bundleno = 212 (0xd4), region = 52 }
  0xc8   : > { %v339_v27 = vadd.f32 %v636_v20, %v312_v25  ;;  %v340_v28 = vadd.f32 %v636_v20, %v315_v26 }
  0xca   : > { %343 = vst [vmem:[%s250_s12 + $0x10] sm:$0xff] %v339_v27 }
  0xcb   : > { %344 = vst [vmem:[%s250_s12 + $0x18] sm:$0xff] %v340_v28 }
  0xcd   : > { %v391_v29 = vld [vmem:[%s250_s12] sm:$0xff] }
  0xce   : > { %v393_v30 = vld [vmem:[%s250_s12 + $0x8] sm:$0xff]  ;;  %392 = vst [vmem:[%s356_s25] sm:$0xff] %v391_v29 }
  0xcf   : > { %394 = vst [vmem:[%s356_s25 + $0x18] sm:$0xff] %v393_v30 }
  0xd1   : > { %v395_v31 = vld [vmem:[%s250_s12 + $0x10] sm:$0xff] }
  0xd2   : > { %v397_v32 = vld [vmem:[%s250_s12 + $0x18] sm:$0xff]  ;;  %396 = vst [vmem:[%s356_s25 + $0x30] sm:$0xff] %v395_v31 }
  0xd3   : > { %398 = vst [vmem:[%s356_s25 + $0x48] sm:$0xff] %v397_v32 }
  0xd4 PF: > { %s17_s17 = sadd.s32 1, %s751_s17   ;;  %s952_s12 = smov %s735_s13 }
  0xd5   : > { %p14_p4 = scmp.ge.s32.totalorder %s17_s17, 5   ;;  %s953_s13 = smov %s739_s14 }
  0xd6   : > { %s954_s14 = smov %s860_s11  ;;  %s955_s15 = smov %s747_s16 }
  0xd7   : > { %s956_s16 = smov %s958_s30  ;;  %16 = sbr.rel (!%p14_p4) target bundleno = 5 (0x5), region = 127 }
  0xdc   :  { %414 = vsyncpa [#allocation4], 1 }
  0xdd   :  { %416 = vsyncpa [#allocation4 + $0x1], 1 }
  0xde   :  { %417 = vsyncpa [#allocation6], 1 }
  0xdf   :  { %419 = vsyncpa [#allocation6 + $0x1], 1 }

// kernel: pyt_multihead_attention_forward.4
= control target key start
LH: loop header
LB: loop body
LE: loop exit
PB: predicated region body
PF: predicated region fallthrough
CT: control target
= control target key end

     0   :  { %s1859_s12 = smov 0   ;;  %s1861_s13 = smov 0   ;;  %s2355_s0 = inlined_call_operand.vmem [shape: f32[16,2,3,4,32], index: 0, kind: input, shape index: {}, may-alias: {0,1,2}]   ;;  %s2356_s1 = inlined_call_operand.vmem [shape: f32[16,2,3,4,32], index: 1, kind: input, shape index: {}, may-alias: {0,1,2}]   ;;  %s2357_s2 = inlined_call_operand.vmem [shape: f32[16,2,3,4,32], index: 2, kind: input, shape index: {}, may-alias: {0,1,2}]   ;;  %s2358_s3 = inlined_call_operand.vmem [shape: f32[16,2,4,32], index: 3, kind: output, shape index: {}]  }
   0x1   :  { %s1863_s14 = smov 0   ;;  %s1865_s15 = smov 0  }
   0x2   :  { %s1867_s16 = smov 0  }
   0x3 LB: > { %s25_s17 = sadd.s32 1, %s1831_s15  ;;  %s1647_s18 = sadd.s32 4294967295, %s1835_s16   ;;  %s1835_s16 = sphi %s1867_s16, %s13_s16   ;;  %s1831_s15 = sphi %s1865_s15, %s2364_s15   ;;  %s1827_s14 = sphi %s1863_s14, %s2363_s14   ;;  %s1823_s13 = sphi %s1861_s13, %s2362_s13   ;;  %s1819_s12 = sphi %s1859_s12, %s2361_s12  }
   0x4   : > { %p27_p0 = scmp.ge.s32.totalorder %s25_s17, 2  ;;  %p41_p1 = scmp.ne.s32.totalorder %s1823_s13, %s1819_s12 }
   0x5   : > { %p42_p2 = scmp.eq.s32.totalorder %s1835_s16, 0  ;;  %p129_p4 = scmp.eq.s32.totalorder %s1647_s18, 1 }
   0x6   : > { %s2366_s17 = smov (%p27_p0, %s25_s17), 0  ;;  %s34_s21 = sadd.s32 1, %s1823_s13 }
   0x7   : > { %p1891_p3 = por %p42_p2, %p41_p1  ;;  %s29_s20 = ssub.s32 %s1831_s15, %s2366_s17 }
   0x8   : > { %p32_p5 = scmp.eq.s32.totalorder %s29_s20, 0  ;;  %p1898_p6 = por %p129_p4, %p41_p1 }
   0x9   : > { %p1650_p7 = scmp.ge.s32.totalorder %s1835_s16, 2 }
   0xa   : > { %s1903_s23 = scalar_select %p32_p5, %s1823_s13, %s34_s21  }
   0xb   : > { %151 = sbr.rel (%p1650_p7) target bundleno = 79 (0x4f), region = 16 }
  0x10   : > { %154 = sbr.rel (!%p1891_p3) target bundleno = 37 (0x25), region = 20  ;;  %s156_s24 = sand.u32 (%p1891_p3), 1, %s1823_s13  }
  0x11   : > { %s1722_s25 = smul.u32 (%p1891_p3), 12, %s1831_s15  ;;  %s1651_s26 = sshll.u32 (%p1891_p3), %s156_s24, 6 }
  0x12   : > { %s158_s30 = scalar_lea.vmem (%p1891_p3), [#allocation2], %s1651_s26 }
  0x13   : > { %s1913_s29 = scalar_lea.vmem (%p1891_p3), %s2355_s0, %s1722_s25 }
  0x14   : > { %v179_v0 = vld [vmem:[%s1913_s29] sm:$0xf] (%p1891_p3)  ;;  %v181_v1 = vld [vmem:[%s1913_s29 + $0x18] sm:$0xf] (%p1891_p3)  ;;  %v183_v2 = vld [vmem:[%s1913_s29 + $0x30] sm:$0xf] (%p1891_p3) }
  0x15   : > { %180 = vst [vmem:[%s158_s30] sm:$0xf] %v179_v0  ;;  %v185_v3 = vld [vmem:[%s1913_s29 + $0x48] sm:$0xf]  ;;  %v187_v4 = vld [vmem:[%s1913_s29 + $0x60] sm:$0xf] }
  0x16   : > { %182 = vst [vmem:[%s158_s30 + $0x4] sm:$0xf] %v181_v1  ;;  %v189_v5 = vld [vmem:[%s1913_s29 + $0x78] sm:$0xf]  ;;  %v191_v6 = vld [vmem:[%s1913_s29 + $0x90] sm:$0xf] }
  0x17   : > { %184 = vst [vmem:[%s158_s30 + $0x8] sm:$0xf] %v183_v2  ;;  %v193_v7 = vld [vmem:[%s1913_s29 + $0xa8] sm:$0xf]  ;;  %v195_v8 = vld [vmem:[%s1913_s29 + $0xc0] sm:$0xf] }
  0x18   : > { %186 = vst [vmem:[%s158_s30 + $0xc] sm:$0xf] %v185_v3  ;;  %v197_v9 = vld [vmem:[%s1913_s29 + $0xd8] sm:$0xf]  ;;  %v199_v10 = vld [vmem:[%s1913_s29 + $0xf0] sm:$0xf] }
  0x19   : > { %188 = vst [vmem:[%s158_s30 + $0x10] sm:$0xf] %v187_v4  ;;  %v201_v11 = vld [vmem:[%s1913_s29 + $0x108] sm:$0xf]  ;;  %v203_v12 = vld [vmem:[%s1913_s29 + $0x120] sm:$0xf] }
  0x1a   : > { %190 = vst [vmem:[%s158_s30 + $0x14] sm:$0xf] %v189_v5  ;;  %v205_v13 = vld [vmem:[%s1913_s29 + $0x138] sm:$0xf]  ;;  %v207_v14 = vld [vmem:[%s1913_s29 + $0x150] sm:$0xf] }
  0x1b   : > { %192 = vst [vmem:[%s158_s30 + $0x18] sm:$0xf] %v191_v6  ;;  %v209_v15 = vld [vmem:[%s1913_s29 + $0x168] sm:$0xf] }
  0x1c   : > { %194 = vst [vmem:[%s158_s30 + $0x1c] sm:$0xf] %v193_v7 }
  0x1d   : > { %196 = vst [vmem:[%s158_s30 + $0x20] sm:$0xf] %v195_v8 }
  0x1e   : > { %198 = vst [vmem:[%s158_s30 + $0x24] sm:$0xf] %v197_v9 }
  0x1f   : > { %200 = vst [vmem:[%s158_s30 + $0x28] sm:$0xf] %v199_v10 }
  0x20   : > { %202 = vst [vmem:[%s158_s30 + $0x2c] sm:$0xf] %v201_v11 }
  0x21   : > { %204 = vst [vmem:[%s158_s30 + $0x30] sm:$0xf] %v203_v12 }
  0x22   : > { %206 = vst [vmem:[%s158_s30 + $0x34] sm:$0xf] %v205_v13 }
  0x23   : > { %208 = vst [vmem:[%s158_s30 + $0x38] sm:$0xf] %v207_v14 }
  0x24   : > { %210 = vst [vmem:[%s158_s30 + $0x3c] sm:$0xf] %v209_v15 }
  0x25 PF: > { %266 = sbr.rel (!%p1891_p3) target bundleno = 58 (0x3a), region = 61  ;;  %s268_s4 = sand.u32 (%p1891_p3), 1, %s1823_s13  }
  0x26   : > { %s1654_s5 = smul.u32 (%p1891_p3), 12, %s1831_s15  ;;  %s1653_s6 = sshll.u32 (%p1891_p3), %s268_s4, 6 }
  0x27   : > { %s270_s10 = scalar_lea.vmem (%p1891_p3), [#allocation3], %s1653_s6 }
  0x28   : > { %s1938_s9 = scalar_lea.vmem (%p1891_p3), %s2356_s1, %s1654_s5 }
  0x29   : > { %v1655_v16 = vld [vmem:[%s1938_s9 + $0x4] sm:$0xf] (%p1891_p3)  ;;  %v1656_v17 = vld [vmem:[%s1938_s9 + $0x1c] sm:$0xf] (%p1891_p3)  ;;  %v1657_v18 = vld [vmem:[%s1938_s9 + $0x34] sm:$0xf] (%p1891_p3) }
  0x2a   : > { %293 = vst [vmem:[%s270_s10] sm:$0xf] %v1655_v16  ;;  %v1658_v19 = vld [vmem:[%s1938_s9 + $0x4c] sm:$0xf]  ;;  %v1659_v20 = vld [vmem:[%s1938_s9 + $0x64] sm:$0xf] }
  0x2b   : > { %295 = vst [vmem:[%s270_s10 + $0x4] sm:$0xf] %v1656_v17  ;;  %v1660_v21 = vld [vmem:[%s1938_s9 + $0x7c] sm:$0xf]  ;;  %v1661_v22 = vld [vmem:[%s1938_s9 + $0x94] sm:$0xf] }
  0x2c   : > { %297 = vst [vmem:[%s270_s10 + $0x8] sm:$0xf] %v1657_v18  ;;  %v1662_v23 = vld [vmem:[%s1938_s9 + $0xac] sm:$0xf]  ;;  %v1663_v24 = vld [vmem:[%s1938_s9 + $0xc4] sm:$0xf] }
  0x2d   : > { %299 = vst [vmem:[%s270_s10 + $0xc] sm:$0xf] %v1658_v19  ;;  %v1664_v25 = vld [vmem:[%s1938_s9 + $0xdc] sm:$0xf]  ;;  %v1665_v26 = vld [vmem:[%s1938_s9 + $0xf4] sm:$0xf] }
  0x2e   : > { %301 = vst [vmem:[%s270_s10 + $0x10] sm:$0xf] %v1659_v20  ;;  %v1666_v27 = vld [vmem:[%s1938_s9 + $0x10c] sm:$0xf]  ;;  %v1667_v28 = vld [vmem:[%s1938_s9 + $0x124] sm:$0xf] }
  0x2f   : > { %303 = vst [vmem:[%s270_s10 + $0x14] sm:$0xf] %v1660_v21  ;;  %v1668_v29 = vld [vmem:[%s1938_s9 + $0x13c] sm:$0xf]  ;;  %v1669_v30 = vld [vmem:[%s1938_s9 + $0x154] sm:$0xf] }
  0x30   : > { %305 = vst [vmem:[%s270_s10 + $0x18] sm:$0xf] %v1661_v22  ;;  %v1670_v31 = vld [vmem:[%s1938_s9 + $0x16c] sm:$0xf] }
  0x31   : > { %307 = vst [vmem:[%s270_s10 + $0x1c] sm:$0xf] %v1662_v23 }
  0x32   : > { %309 = vst [vmem:[%s270_s10 + $0x20] sm:$0xf] %v1663_v24 }
  0x33   : > { %311 = vst [vmem:[%s270_s10 + $0x24] sm:$0xf] %v1664_v25 }
  0x34   : > { %313 = vst [vmem:[%s270_s10 + $0x28] sm:$0xf] %v1665_v26 }
  0x35   : > { %315 = vst [vmem:[%s270_s10 + $0x2c] sm:$0xf] %v1666_v27 }
  0x36   : > { %317 = vst [vmem:[%s270_s10 + $0x30] sm:$0xf] %v1667_v28 }
  0x37   : > { %319 = vst [vmem:[%s270_s10 + $0x34] sm:$0xf] %v1668_v29 }
  0x38   : > { %321 = vst [vmem:[%s270_s10 + $0x38] sm:$0xf] %v1669_v30 }
  0x39   : > { %323 = vst [vmem:[%s270_s10 + $0x3c] sm:$0xf] %v1670_v31 }
  0x3a PF: > { %379 = sbr.rel (!%p1891_p3) target bundleno = 79 (0x4f), region = 102  ;;  %s381_s11 = sand.u32 (%p1891_p3), 1, %s1823_s13  }
  0x3b   : > { %s1672_s18 = smul.u32 (%p1891_p3), 12, %s1831_s15  ;;  %s1671_s20 = sshll.u32 (%p1891_p3), %s381_s11, 6 }
  0x3c   : > { %s383_s19 = scalar_lea.vmem (%p1891_p3), [#allocation4], %s1671_s20 }
  0x3d   : > { %s1963_s25 = scalar_lea.vmem (%p1891_p3), %s2357_s2, %s1672_s18 }
  0x3e   : > { %v1673_v32 = vld [vmem:[%s1963_s25 + $0x8] sm:$0xf] (%p1891_p3)  ;;  %v1674_v33 = vld [vmem:[%s1963_s25 + $0x20] sm:$0xf] (%p1891_p3)  ;;  %v1675_v34 = vld [vmem:[%s1963_s25 + $0x38] sm:$0xf] (%p1891_p3) }
  0x3f   : > { %406 = vst [vmem:[%s383_s19] sm:$0xf] %v1673_v32  ;;  %v1676_v35 = vld [vmem:[%s1963_s25 + $0x50] sm:$0xf]  ;;  %v1677_v36 = vld [vmem:[%s1963_s25 + $0x68] sm:$0xf] }
  0x40   : > { %408 = vst [vmem:[%s383_s19 + $0x4] sm:$0xf] %v1674_v33  ;;  %v1678_v37 = vld [vmem:[%s1963_s25 + $0x80] sm:$0xf]  ;;  %v1679_v38 = vld [vmem:[%s1963_s25 + $0x98] sm:$0xf] }
  0x41   : > { %410 = vst [vmem:[%s383_s19 + $0x8] sm:$0xf] %v1675_v34  ;;  %v1680_v39 = vld [vmem:[%s1963_s25 + $0xb0] sm:$0xf]  ;;  %v1681_v40 = vld [vmem:[%s1963_s25 + $0xc8] sm:$0xf] }
  0x42   : > { %412 = vst [vmem:[%s383_s19 + $0xc] sm:$0xf] %v1676_v35  ;;  %v1682_v41 = vld [vmem:[%s1963_s25 + $0xe0] sm:$0xf]  ;;  %v1683_v42 = vld [vmem:[%s1963_s25 + $0xf8] sm:$0xf] }
  0x43   : > { %414 = vst [vmem:[%s383_s19 + $0x10] sm:$0xf] %v1677_v36  ;;  %v1684_v43 = vld [vmem:[%s1963_s25 + $0x110] sm:$0xf]  ;;  %v1685_v44 = vld [vmem:[%s1963_s25 + $0x128] sm:$0xf] }
  0x44   : > { %416 = vst [vmem:[%s383_s19 + $0x14] sm:$0xf] %v1678_v37  ;;  %v1686_v45 = vld [vmem:[%s1963_s25 + $0x140] sm:$0xf]  ;;  %v1687_v46 = vld [vmem:[%s1963_s25 + $0x158] sm:$0xf] }
  0x45   : > { %418 = vst [vmem:[%s383_s19 + $0x18] sm:$0xf] %v1679_v38  ;;  %v1688_v47 = vld [vmem:[%s1963_s25 + $0x170] sm:$0xf] }
  0x46   : > { %420 = vst [vmem:[%s383_s19 + $0x1c] sm:$0xf] %v1680_v39 }
  0x47   : > { %422 = vst [vmem:[%s383_s19 + $0x20] sm:$0xf] %v1681_v40 }
  0x48   : > { %424 = vst [vmem:[%s383_s19 + $0x24] sm:$0xf] %v1682_v41 }
  0x49   : > { %426 = vst [vmem:[%s383_s19 + $0x28] sm:$0xf] %v1683_v42 }
  0x4a   : > { %428 = vst [vmem:[%s383_s19 + $0x2c] sm:$0xf] %v1684_v43 }
  0x4b   : > { %430 = vst [vmem:[%s383_s19 + $0x30] sm:$0xf] %v1685_v44 }
  0x4c   : > { %432 = vst [vmem:[%s383_s19 + $0x34] sm:$0xf] %v1686_v45 }
  0x4d   : > { %434 = vst [vmem:[%s383_s19 + $0x38] sm:$0xf] %v1687_v46 }
  0x4e   : > { %436 = vst [vmem:[%s383_s19 + $0x3c] sm:$0xf] %v1688_v47 }
  0x4f PF: > { %p1689_p8 = scmp.ge.s32.totalorder %s1835_s16, 1  ;;  %p491_p9 = scmp.lt.s32.totalorder %s1835_s16, 3 }
  0x51   : > { %p492_p10 = pnand %p1689_p8, %p491_p9 }
  0x52   : > { %s498_s26 = sand.u32 (!%p492_p10), 1, %s1819_s12  }
  0x53   : > { %495 = sbr.rel (%p492_p10) target bundleno = 691 (0x2b3), region = 143  ;;  %s1984_s27 = sshll.u32 (!%p492_p10), %s498_s26, 6 }
  0x54   : > { %s1987_s28 = scalar_lea.vmem (!%p492_p10), [#allocation3], %s1984_s27  ;;  %s2030_s12 = scalar_lea.vmem (!%p492_p10), [#allocation2], %s1984_s27 }
  0x55   : > { %s2169_s29 = scalar_lea.vmem (!%p492_p10), [#allocation4], %s1984_s27  ;;  %s2258_s30 = scalar_lea.vmem (!%p492_p10), [#allocation5], %s1984_s27 }
  0x58   : > { %v1837_v48 = vmov 1983009808   ;;  %vm559_vm0 = vcmask 1047556   ;;  %v1838_v50 = vmov 1934713408   ;;  %vm927_vm1 = vcmask 261120  }
  0x59   : > { %v562_v49 = vunpack.c.l.s4 %v1837_v48  ;;  %v588_v51 = vunpack.c.l.s4 %v1838_v50  ;;  %v679_v52 = vld [vmem:[%s1987_s28 + $0x20] sm:$0xf]  ;;  %v680_v53 = vld [vmem:[%s1987_s28 + $0x24] sm:$0xf]  ;;  %v681_v54 = vld [vmem:[%s1987_s28 + $0x28] sm:$0xf] }
  0x5a   : > { %v682_v55 = vld [vmem:[%s1987_s28 + $0x2c] sm:$0xf]  ;;  %v683_v56 = vld [vmem:[%s1987_s28 + $0x30] sm:$0xf]  ;;  %v684_v57 = vld [vmem:[%s1987_s28 + $0x34] sm:$0xf] }
  0x5b   : > { %v1995_v58 = vunpack.c.0.s8 %v562_v49  ;;  %v685_v59 = vld [vmem:[%s1987_s28 + $0x38] sm:$0xf]  ;;  %v686_v60 = vld [vmem:[%s1987_s28 + $0x3c] sm:$0xf]  ;;  %v743_v61 = vrot.slane %v681_v54, 4  ;;  %v749_v62 = vrot.slane %v682_v55, 4  ;;  %v1999_v1 = vunpack.c.0.s8 %v588_v51 }
  0x5c   : > { %v755_v63 = vrot.slane %v685_v59, 4  ;;  %v761_v0 = vrot.slane %v686_v60, 4  ;;  %v671_v4 = vld [vmem:[%s1987_s28] sm:$0xf]  ;;  %v673_v5 = vld [vmem:[%s1987_s28 + $0x8] sm:$0xf] }
  0x5d   : > { %v744_v2 = vsel %vm559_vm0, %v743_v61, %v679_v52  ;;  %v750_v3 = vsel %vm559_vm0, %v749_v62, %v680_v53  ;;  %v674_v6 = vld [vmem:[%s1987_s28 + $0xc] sm:$0xf]  ;;  %v672_v11 = vld [vmem:[%s1987_s28 + $0x4] sm:$0xf]  ;;  %v677_v12 = vld [vmem:[%s1987_s28 + $0x18] sm:$0xf] }
  0x5e   : > { %v748_v7 = vperm.slane %v744_v2, %v1995_v58  ;;  %v754_v8 = vperm.slane %v750_v3, %v1995_v58  ;;  %v756_v9 = vsel %vm559_vm0, %v755_v63, %v683_v56  ;;  %v762_v10 = vsel %vm559_vm0, %v761_v0, %v684_v57  ;;  %v678_v13 = vld [vmem:[%s1987_s28 + $0x1c] sm:$0xf]  ;;  %v675_v24 = vld [vmem:[%s1987_s28 + $0x10] sm:$0xf]  ;;  %v676_v25 = vld [vmem:[%s1987_s28 + $0x14] sm:$0xf] }
  0x5f   : > { %v760_v14 = vperm.slane %v756_v9, %v1995_v58  ;;  %v766_v15 = vperm.slane %v762_v10, %v1995_v58  ;;  %v687_v16 = vrot.slane %v673_v5, 4  ;;  %v693_v17 = vrot.slane %v674_v6, 4  ;;  %v544_v36 = vld [vmem:[%s2030_s12 + $0x8] sm:$0xf]  ;;  %v545_v37 = vld [vmem:[%s2030_s12 + $0xc] sm:$0xf] }
  0x60   : > { %v767_v18 = vrot.slane %v754_v8, 4  ;;  %v769_v19 = vrot.slane %v748_v7, 4  ;;  %v699_v20 = vrot.slane %v677_v12, 4  ;;  %v705_v21 = vrot.slane %v678_v13, 4  ;;  %v542_v46 = vld [vmem:[%s2030_s12] sm:$0xf] }
  0x61   : > { %v779_v22 = vrot.slane %v766_v15, 4  ;;  %v781_v23 = vrot.slane %v760_v14, 4  ;;  %v688_v26 = vsel %vm559_vm0, %v687_v16, %v671_v4  ;;  %v694_v27 = vsel %vm559_vm0, %v693_v17, %v672_v11  ;;  %v548_v49 = vld [vmem:[%s2030_s12 + $0x18] sm:$0xf]  ;;  %v543_v56 = vld [vmem:[%s2030_s12 + $0x4] sm:$0xf] }
  0x62   : > { %v768_v28 = vsel %vm559_vm0, %v767_v18, %v748_v7  ;;  %v770_v29 = vsel %vm559_vm0, %v754_v8, %v769_v19  ;;  %v692_v30 = vperm.slane %v688_v26, %v1995_v58  ;;  %v698_v31 = vperm.slane %v694_v27, %v1995_v58  ;;  %v546_v62 = vld [vmem:[%s2030_s12 + $0x10] sm:$0xf]  ;;  %v549_v63 = vld [vmem:[%s2030_s12 + $0x1c] sm:$0xf]  ;;  %v547_v7 = vld [vmem:[%s2030_s12 + $0x14] sm:$0xf] }
  0x63   : > { %v774_v32 = vperm.slane %v768_v28, %v1999_v1  ;;  %v780_v33 = vsel %vm559_vm0, %v779_v22, %v760_v14  ;;  %v2026_v34 = vperm.slane %v770_v29, %v1999_v1  ;;  %v782_v35 = vsel %vm559_vm0, %v766_v15, %v781_v23  ;;  %v552_v26 = vld [vmem:[%s2030_s12 + $0x28] sm:$0xf]  ;;  %v553_v27 = vld [vmem:[%s2030_s12 + $0x2c] sm:$0xf]  ;;  %v556_v28 = vld [vmem:[%s2030_s12 + $0x38] sm:$0xf] }
  0x64   : > { %v786_v38 = vperm.slane %v780_v33, %v1999_v1  ;;  %v790_v39 = vperm.slane %v782_v35, %v1999_v1  ;;  %v700_v40 = vsel %vm559_vm0, %v699_v20, %v675_v24  ;;  %v706_v41 = vsel %vm559_vm0, %v705_v21, %v676_v25  ;;  %v550_v33 = vld [vmem:[%s2030_s12 + $0x20] sm:$0xf]  ;;  %s1719_s4 = sshll.u32 (%p1898_p6), %s1827_s14, 2 }
  0x65   : > { %v704_v42 = vperm.slane %v700_v40, %v1995_v58  ;;  %v710_v43 = vperm.slane %v706_v41, %v1995_v58  ;;  %v711_v44 = vrot.slane %v698_v31, 4  ;;  %v713_v45 = vrot.slane %v692_v30, 4  ;;  %v554_v41 = vld [vmem:[%s2030_s12 + $0x30] sm:$0xf]  ;;  %s1435_s7 = scalar_lea.vmem (%p1898_p6), %s2358_s3, %s1719_s4 }
  0x66   : > { %v791_v47 = vrot.slane %v786_v38, 4  ;;  %v795_v48 = vrot.slane %v790_v39, 4  ;;  %v558_v50 = vrot.slane %v544_v36, 4  ;;  %v565_v51 = vrot.slane %v545_v37, 4 }
  0x67   : > { %v712_v52 = vsel %vm559_vm0, %v711_v44, %v692_v30  ;;  %v723_v53 = vrot.slane %v710_v43, 4  ;;  %v714_v54 = vsel %vm559_vm0, %v698_v31, %v713_v45  ;;  %v725_v55 = vrot.slane %v704_v42, 4 }
  0x68   : > { %v792_v57 = vsel %vm559_vm0, %v791_v47, %v774_v32  ;;  %v796_v59 = vsel %vm559_vm0, %v795_v48, %v2026_v34  ;;  %v718_v60 = vperm.slane %v712_v52, %v1999_v1  ;;  %v722_v61 = vperm.slane %v714_v54, %v1999_v1  ;;  %v557_v48 = vld [vmem:[%s2030_s12 + $0x3c] sm:$0xf]  ;;  %v555_v54 = vld [vmem:[%s2030_s12 + $0x34] sm:$0xf] }
  0x69   : > { %1694 = vmatpush.xpose.msk.msra.mxu0 %vm927_vm1, %v792_v57  ;;  %1702 = vmatpush.xpose.msk.msra.mxu2 %vm927_vm1, %v796_v59  ;;  %v724_v0 = vsel %vm559_vm0, %v723_v53, %v704_v42  ;;  %v726_v2 = vsel %vm559_vm0, %v710_v43, %v725_v55  ;;  %v560_v3 = vsel %vm559_vm0, %v558_v50, %v542_v46  ;;  %v571_v4 = vrot.slane %v548_v49, 4 }
  0x6a   : > { %v730_v5 = vperm.slane %v724_v0, %v1999_v1  ;;  %v734_v6 = vperm.slane %v726_v2, %v1999_v1  ;;  %v564_v8 = vperm.slane %v560_v3, %v1995_v58  ;;  %v566_v9 = vsel %vm559_vm0, %v565_v51, %v543_v56 }
  0x6b   : > { %v570_v10 = vperm.slane %v566_v9, %v1995_v58  ;;  %v572_v11 = vsel %vm559_vm0, %v571_v4, %v546_v62  ;;  %v577_v12 = vrot.slane %v549_v63, 4  ;;  %v793_v13 = vrot.slane %v774_v32, 4 }
  0x6c   : > { %v735_v14 = vrot.slane %v730_v5, 4  ;;  %v739_v15 = vrot.slane %v734_v6, 4  ;;  %v576_v16 = vperm.slane %v572_v11, %v1995_v58  ;;  %v585_v17 = vrot.slane %v564_v8, 4 }
  0x6d   : > { %v578_v18 = vsel %vm559_vm0, %v577_v12, %v547_v7  ;;  %v583_v19 = vrot.slane %v570_v10, 4  ;;  %v794_v20 = vsel %vm559_vm0, %v786_v38, %v793_v13  ;;  %v797_v21 = vrot.slane %v2026_v34, 4  ;;  %v551_v38 = vld [vmem:[%s2030_s12 + $0x24] sm:$0xf] }
  0x6e   : > { %v736_v22 = vsel %vm559_vm0, %v735_v14, %v718_v60  ;;  %v740_v23 = vsel %vm559_vm0, %v739_v15, %v722_v61  ;;  %v582_v24 = vperm.slane %v578_v18, %v1995_v58  ;;  %v586_v25 = vsel %vm559_vm0, %v570_v10, %v585_v17  ;;  %1698 = vmatpush.xpose.msk.msra.mxu1 %vm927_vm1, %v794_v20 }
  0x6f   : > { %1695 = vmatpush.xpose.msk.msra.mxu0 %vm927_vm1, %v736_v22  ;;  %1703 = vmatpush.xpose.msk.msra.mxu2 %vm927_vm1, %v740_v23  ;;  %v584_v29 = vsel %vm559_vm0, %v583_v19, %v564_v8  ;;  %v594_v30 = vperm.slane %v586_v25, %v1999_v1  ;;  %v597_v31 = vrot.slane %v576_v16, 4  ;;  %v798_v32 = vsel %vm559_vm0, %v790_v39, %v797_v21 }
  0x70   : > { %v590_v34 = vperm.slane %v584_v29, %v1999_v1  ;;  %v595_v35 = vrot.slane %v582_v24, 4  ;;  %1706 = vmatpush.xpose.msk.msra.mxu3 %vm927_vm1, %v798_v32  ;;  %v737_v36 = vrot.slane %v718_v60, 4  ;;  %v741_v37 = vrot.slane %v722_v61, 4 }
  0x71   : > { %v598_v40 = vsel %vm559_vm0, %v582_v24, %v597_v31  ;;  %v615_v42 = vrot.slane %v552_v26, 4  ;;  %v621_v43 = vrot.slane %v553_v27, 4  ;;  %v627_v44 = vrot.slane %v556_v28, 4 }
  0x72   : > { %v596_v45 = vsel %vm559_vm0, %v595_v35, %v576_v16  ;;  %v606_v39 = vperm.slane %v598_v40, %v1999_v1  ;;  %v738_v46 = vsel %vm559_vm0, %v730_v5, %v737_v36  ;;  %v742_v47 = vsel %vm559_vm0, %v734_v6, %v741_v37 }
  0x73   : > { %v602_v49 = vperm.slane %v596_v45, %v1999_v1  ;;  %1699 = vmatpush.xpose.msk.msra.mxu1 %vm927_vm1, %v738_v46  ;;  %v609_v50 = vrot.slane %v590_v34, 4  ;;  %v616_v51 = vsel %vm559_vm0, %v615_v42, %v550_v33  ;;  %v622_v52 = vsel %vm559_vm0, %v621_v43, %v551_v38 }
  0x74   : > { %v611_v53 = vrot.slane %v606_v39, 4  ;;  %1707 = vmatpush.xpose.msk.msra.mxu3 %vm927_vm1, %v742_v47  ;;  %v620_v55 = vperm.slane %v616_v51, %v1995_v58  ;;  %v626_v56 = vperm.slane %v622_v52, %v1995_v58  ;;  %v628_v57 = vsel %vm559_vm0, %v627_v44, %v554_v41 }
  0x75   : > { %v607_v59 = vrot.slane %v602_v49, 4  ;;  %v610_v60 = vsel %vm559_vm0, %v602_v49, %v609_v50  ;;  %v632_v61 = vperm.slane %v628_v57, %v1995_v58  ;;  %v633_v62 = vrot.slane %v557_v48, 4 }
  0x76   : > { %v612_v63 = vsel %vm559_vm0, %v611_v53, %v594_v30  ;;  %1700 = vmatmul.msk.f32.vlgmr.msra.gmra.mxu1 %vm927_vm1, %v610_v60  ;;  %v641_v0 = vrot.slane %v620_v55, 4  ;;  %v613_v2 = vrot.slane %v594_v30, 4  ;;  %v639_v3 = vrot.slane %v626_v56, 4 }
  0x77   : > { %v608_v4 = vsel %vm559_vm0, %v607_v59, %v590_v34  ;;  %1704 = vmatmul.msk.f32.vlgmr.msra.gmra.mxu2 %vm927_vm1, %v612_v63  ;;  %v634_v5 = vsel %vm559_vm0, %v633_v62, %v555_v54  ;;  %v653_v6 = vrot.slane %v632_v61, 4  ;;  %vm1068_vm2 = vcmask 130048  }
  0x78   : > { %1696 = vmatmul.msk.f32.vlgmr.msra.gmra.mxu0 %vm927_vm1, %v608_v4  ;;  %v638_v7 = vperm.slane %v634_v5, %v1995_v58  ;;  %v642_v8 = vsel %vm559_vm0, %v626_v56, %v641_v0  ;;  %v614_v9 = vsel %vm559_vm0, %v606_v39, %v613_v2  ;;  %v640_v10 = vsel %vm559_vm0, %v639_v3, %v620_v55 }
  0x79   : > { %v650_v11 = vperm.slane %v642_v8, %v1999_v1  ;;  %1708 = vmatmul.msk.f32.vlgmr.msra.gmra.mxu3 %vm927_vm1, %v614_v9  ;;  %v646_v12 = vperm.slane %v640_v10, %v1999_v1  ;;  %vm1409_vm3 = vcmask 257024  }
  0x7a   : > { %v654_v13 = vsel %vm559_vm0, %v638_v7, %v653_v6  ;;  %v651_v14 = vrot.slane %v638_v7, 4 }
  0x7b   : > { %v662_v15 = vperm.slane %v654_v13, %v1999_v1  ;;  %v665_v16 = vrot.slane %v646_v12, 4  ;;  %v669_v17 = vrot.slane %v650_v11, 4 }
  0x7c   : > { %v652_v18 = vsel %vm559_vm0, %v651_v14, %v632_v61 }
  0x7d   : > { %v667_v19 = vrot.slane %v662_v15, 4  ;;  %v658_v20 = vperm.slane %v652_v18, %v1999_v1  ;;  %v670_v21 = vsel %vm559_vm0, %v662_v15, %v669_v17 }
  0x7f   : > { %v668_v22 = vsel %vm559_vm0, %v667_v19, %v650_v11  ;;  %v666_v23 = vsel %vm559_vm0, %v658_v20, %v665_v16  ;;  %v663_v24 = vrot.slane %v658_v20, 4  ;;  %v814_v20 = vld [vmem:[%s2169_s29 + $0x3c] sm:$0xf] }
  0x80   : > { %1705 = vmatmul.msk.f32.gmra.mxu2 %vm927_vm1, %v668_v22  ;;  %1701 = vmatmul.msk.f32.gmra.mxu1 %vm927_vm1, %v666_v23  ;;  %v810_v22 = vld [vmem:[%s2169_s29 + $0x2c] sm:$0xf]  ;;  %v812_v23 = vld [vmem:[%s2169_s29 + $0x34] sm:$0xf] }
  0x81   : > { %1709 = vmatmul.msk.f32.gmra.mxu3 %vm927_vm1, %v670_v21  ;;  %v664_v25 = vsel %vm559_vm0, %v663_v24, %v646_v12  ;;  %v889_v21 = vrot.slane %v814_v20, 4  ;;  %v813_v24 = vld [vmem:[%s2169_s29 + $0x38] sm:$0xf] }
  0x82   : > { %1697 = vmatmul.msk.f32.gmra.mxu0 %vm927_vm1, %v664_v25  ;;  %v877_v25 = vrot.slane %v810_v22, 4 }
  0xf3   : > { %v992_v28 = vpop.f32.mrf.mxu1 }
  0xf4   : > { %v1075_v31 = vsel %vm1068_vm2, %v992_v28, -inf }
  0xf5   : > { %v957_v26 = vpop.f32.mrf.mxu0 }
  0xf6   : > { %v1069_v27 = vsel %vm1068_vm2, %v957_v26, -inf }
  0xf7   : > { %1070 = vmax.xlane.f32.xlu1 %v1069_v27  ;;  %v890_v27 = vsel %vm559_vm0, %v889_v21, %v812_v23 }
  0xfa   : > { %v1027_v29 = vpop.f32.mrf.mxu2 }
  0xfb   : > { %v1081_v30 = vsel %vm1068_vm2, %v1027_v29, -inf }
  0xfc   : > { %1082 = vmax.xlane.f32.xlu0 %v1081_v30  ;;  %v1062_v32 = vpop.f32.mrf.mxu3  ;;  %v809_v30 = vld [vmem:[%s2169_s29 + $0x28] sm:$0xf] }
  0xfd   : > { %v1087_v33 = vsel %vm1068_vm2, %v1062_v32, -inf  ;;  %v995_v34 = vpop.f32.mrf.mxu1 }
  0xfe   : > { %v1078_v37 = vsel %vm1068_vm2, %v995_v34, -inf }
  0xff   : > { %1076 = vmax.xlane.f32.xlu1 %v1075_v31  ;;  %v960_v38 = vpop.f32.mrf.mxu0  ;;  %v811_v31 = vld [vmem:[%s2169_s29 + $0x30] sm:$0xf] }
 0x100   : > { %v1072_v41 = vsel %vm1068_vm2, %v960_v38, -inf }
 0x103   : > { %v1030_v35 = vpop.f32.mrf.mxu2 }
 0x104   : > { %1088 = vmax.xlane.f32.xlu0 %v1087_v33  ;;  %v1084_v36 = vsel %vm1068_vm2, %v1030_v35, -inf  ;;  %v1065_v40 = vpop.f32.mrf.mxu3  ;;  %v871_v33 = vrot.slane %v809_v30, 4 }
 0x105   : > { %1085 = vmax.xlane.f32.xlu2 %v1084_v36  ;;  %v1090_v42 = vsel %vm1068_vm2, %v1065_v40, -inf  ;;  %v802_v36 = vld [vmem:[%s2169_s29 + $0xc] sm:$0xf] }
 0x107   : > { %1079 = vmax.xlane.f32.xlu1 %v1078_v37  ;;  %v804_v37 = vld [vmem:[%s2169_s29 + $0x14] sm:$0xf] }
 0x10c   : > { %1073 = vmax.xlane.f32.xlu0 %v1072_v41 }
 0x10d   : > { %1091 = vmax.xlane.f32.xlu2 %v1090_v42 }
 0x16a   : > { %v1071_v43 = vpop.xlane.xlu1 %1070 }
 0x16b   : > { %v1093_v44 = vsub.f32 %v957_v26, %v1071_v43  ;;  %v883_v26 = vrot.slane %v813_v24, 4 }
 0x16d   : > { %v1101_v45 = vmul.f32 1.442695, %v1093_v44  ;;  %v800_v44 = vld [vmem:[%s2169_s29 + $0x4] sm:$0xf] }
 0x16f   : > { %1765 = vpow2.f32 %v1101_v45  ;;  %v1083_v39 = vpop.xlane.xlu0 %1082  ;;  %v821_v45 = vrot.slane %v802_v36, 4 }
 0x170   : > { %v1097_v46 = vsub.f32 %v1027_v29, %v1083_v39  ;;  %v808_v29 = vld [vmem:[%s2169_s29 + $0x24] sm:$0xf] }
 0x172   : > { %v1109_v47 = vmul.f32 1.442695, %v1097_v46  ;;  %v1077_v48 = vpop.xlane.xlu1 %1076  ;;  %v801_v46 = vld [vmem:[%s2169_s29 + $0x8] sm:$0xf] }
 0x173   : > { %v1095_v49 = vsub.f32 %v992_v28, %v1077_v48  ;;  %v806_v28 = vld [vmem:[%s2169_s29 + $0x1c] sm:$0xf] }
 0x174   : > { %1767 = vpow2.f32 %v1109_v47  ;;  %v805_v47 = vld [vmem:[%s2169_s29 + $0x18] sm:$0xf] }
 0x175   : > { %v2136_v50 = vpop.eup %1765  ;;  %v1105_v51 = vmul.f32 1.442695, %v1095_v49 }
 0x176   : > { %v1117_v52 = vsel %vm1068_vm2, %v2136_v50, 0.0 }
 0x177   : > { %1118 = vadd.xlane.f32.xlu1 %v1117_v52  ;;  %v1089_v53 = vpop.xlane.xlu0 %1088  ;;  %1769 = vpow2.f32 %v1105_v51 }
 0x178   : > { %v1099_v54 = vsub.f32 %v1062_v32, %v1089_v53  ;;  %v1086_v55 = vpop.xlane.xlu2 %1085  ;;  %v894_v32 = vperm.slane %v890_v27, %v1995_v58  ;;  %v799_v53 = vld [vmem:[%s2169_s29] sm:$0xf] }
 0x179   : > { %v1098_v59 = vsub.f32 %v1030_v35, %v1086_v55  ;;  %v884_v35 = vsel %vm559_vm0, %v883_v26, %v811_v31  ;;  %v815_v55 = vrot.slane %v801_v46, 4 }
 0x17a   : > { %v2140_v56 = vpop.eup %1767  ;;  %v1113_v57 = vmul.f32 1.442695, %v1099_v54  ;;  %v1080_v62 = vpop.xlane.xlu1 %1079  ;;  %v888_v42 = vperm.slane %v884_v35, %v1995_v58  ;;  %v907_v43 = vrot.slane %v894_v32, 4  ;;  %v803_v54 = vld [vmem:[%s2169_s29 + $0x10] sm:$0xf] }
 0x17b   : > { %v1129_v60 = vsel %vm1068_vm2, %v2140_v56, 0.0  ;;  %v1111_v61 = vmul.f32 1.442695, %v1098_v59  ;;  %v1096_v6 = vsub.f32 %v995_v34, %v1080_v62  ;;  %v878_v34 = vsel %vm559_vm0, %v877_v25, %v808_v29 }
 0x17c   : > { %1771 = vpow2.f32 %v1113_v57  ;;  %1130 = vadd.xlane.f32.xlu2 %v1129_v60  ;;  %v882_v41 = vperm.slane %v878_v34, %v1995_v58  ;;  %v908_v52 = vsel %vm559_vm0, %v907_v43, %v888_v42  ;;  %v822_v59 = vsel %vm559_vm0, %v821_v45, %v800_v44 }
 0x17d   : > { %v2144_v0 = vpop.eup %1769  ;;  %1773 = vpow2.f32 %v1111_v61  ;;  %v1107_v11 = vmul.f32 1.442695, %v1096_v6  ;;  %v914_v57 = vperm.slane %v908_v52, %v1999_v1  ;;  %v827_v60 = vrot.slane %v805_v47, 4 }
 0x17e   : > { %v1123_v9 = vsel %vm1068_vm2, %v2144_v0, 0.0  ;;  %v895_v51 = vrot.slane %v882_v41, 4 }
 0x17f   : > { %v1074_v63 = vpop.xlane.xlu0 %1073 }
 0x180   : > { %v1092_v2 = vpop.xlane.xlu2 %1091  ;;  %v1094_v3 = vsub.f32 %v960_v38, %v1074_v63  ;;  %v833_v38 = vrot.slane %v806_v28, 4  ;;  %v816_v63 = vsel %vm559_vm0, %v815_v55, %v799_v53 }
 0x181   : > { %v1100_v4 = vsub.f32 %v1065_v40, %v1092_v2  ;;  %v807_v40 = vld [vmem:[%s2169_s29 + $0x20] sm:$0xf]  ;;  %v826_v2 = vperm.slane %v822_v59, %v1995_v58  ;;  %v820_v6 = vperm.slane %v816_v63, %v1995_v58 }
 0x182   : > { %v2146_v5 = vpop.eup %1771  ;;  %v1103_v7 = vmul.f32 1.442695, %v1094_v3  ;;  %v872_v39 = vsel %vm559_vm0, %v871_v33, %v807_v40  ;;  %v834_v48 = vsel %vm559_vm0, %v833_v38, %v804_v37 }
 0x183   : > { %v1115_v8 = vmul.f32 1.442695, %v1100_v4  ;;  %v1135_v10 = vsel %vm1068_vm2, %v2146_v5, 0.0  ;;  %v2152_v12 = vpop.eup %1773  ;;  %v876_v49 = vperm.slane %v872_v39, %v1995_v58  ;;  %v838_v61 = vperm.slane %v834_v48, %v1995_v58 }
 0x184   : > { %1775 = vpow2.f32 %v1103_v7  ;;  %1124 = vadd.xlane.f32.xlu2 %v1123_v9  ;;  %1136 = vadd.xlane.f32.xlu0 %v1135_v10  ;;  %v1132_v15 = vsel %vm1068_vm2, %v2152_v12, 0.0  ;;  %v919_v4 = vrot.slane %v914_v57, 4  ;;  %v828_v7 = vsel %vm559_vm0, %v827_v60, %v803_v54 }
 0x185   : > { %1777 = vpow2.f32 %v1115_v8  ;;  %v896_v62 = vsel %vm559_vm0, %v895_v51, %v876_v49  ;;  %v832_v8 = vperm.slane %v828_v7, %v1995_v58  ;;  %v839_v9 = vrot.slane %v826_v2, 4 }
 0x186   : > { %1779 = vpow2.f32 %v1107_v11  ;;  %v902_v3 = vperm.slane %v896_v62, %v1999_v1  ;;  %v851_v10 = vrot.slane %v838_v61, 4  ;;  %v909_v11 = vrot.slane %v888_v42, 4 }
 0x187   : > { %v853_v24 = vrot.slane %v832_v8, 4  ;;  %v841_v26 = vrot.slane %v820_v6, 4 }
 0x188   : > { %v910_v20 = vsel %vm559_vm0, %v894_v32, %v909_v11  ;;  %v921_v40 = vrot.slane %v902_v3, 4 }
 0x189   : > { %v918_v23 = vperm.slane %v910_v20, %v1999_v1  ;;  %v854_v30 = vsel %vm559_vm0, %v838_v61, %v853_v24  ;;  %v842_v31 = vsel %vm559_vm0, %v826_v2, %v841_v26 }
 0x18a   : > { %v2154_v13 = vpop.eup %1775  ;;  %v862_v32 = vperm.slane %v854_v30, %v1999_v1  ;;  %v850_v35 = vperm.slane %v842_v31, %v1999_v1  ;;  %v922_v42 = vsel %vm559_vm0, %v914_v57, %v921_v40 }
 0x18b   : > { %v2156_v14 = vpop.eup %1777  ;;  %v1120_v16 = vsel %vm1068_vm2, %v2154_v13, 0.0  ;;  %v923_v29 = vrot.slane %v918_v23, 4  ;;  %1230 = vmatpush.msrb.mxu1 %v922_v42 }
 0x18c   : > { %v1138_v17 = vsel %vm1068_vm2, %v2156_v14, 0.0  ;;  %1133 = vadd.xlane.f32.xlu0 %v1132_v15  ;;  %1121 = vadd.xlane.f32.xlu2 %v1120_v16  ;;  %v2164_v18 = vpop.eup %1779  ;;  %v920_v15 = vsel %vm559_vm0, %v919_v4, %v902_v3  ;;  %v840_v16 = vsel %vm559_vm0, %v839_v9, %v820_v6  ;;  %v867_v36 = vrot.slane %v862_v32, 4 }
 0x18d   : > { %1139 = vadd.xlane.f32.xlu1 %v1138_v17  ;;  %v1126_v19 = vsel %vm1068_vm2, %v2164_v18, 0.0  ;;  %1201 = vmatpush.msrb.mxu0 %v920_v15  ;;  %v852_v17 = vsel %vm559_vm0, %v851_v10, %v832_v8  ;;  %v846_v21 = vperm.slane %v840_v16, %v1999_v1  ;;  %v869_v43 = vrot.slane %v850_v35, 4 }
 0x18e   : > { %v858_v22 = vperm.slane %v852_v17, %v1999_v1  ;;  %v868_v37 = vsel %vm559_vm0, %v867_v36, %v850_v35 }
 0x18f   : > { %v865_v44 = vrot.slane %v846_v21, 4  ;;  %v870_v45 = vsel %vm559_vm0, %v862_v32, %v869_v43 }
 0x190   : > { %v863_v27 = vrot.slane %v858_v22, 4 }
 0x191   : > { %v866_v39 = vsel %vm559_vm0, %v858_v22, %v865_v44 }
 0x192   : > { %v864_v33 = vsel %vm559_vm0, %v863_v27, %v846_v21  ;;  %1231 = vmatpush.msrb.mxu1 %v866_v39 }
 0x193   : > { %1202 = vmatpush.msrb.mxu0 %v864_v33 }
 0x194   : > { %1127 = vadd.xlane.f32.xlu0 %v1126_v19  ;;  %v897_v19 = vrot.slane %v876_v49, 4 }
 0x196   : > { %v898_v25 = vsel %vm559_vm0, %v882_v41, %v897_v19 }
 0x197   : > { %v906_v28 = vperm.slane %v898_v25, %v1999_v1 }
 0x199   : > { %v924_v34 = vsel %vm559_vm0, %v923_v29, %v906_v28  ;;  %v925_v38 = vrot.slane %v906_v28, 4 }
 0x19a   : > { %1259 = vmatpush.msrb.mxu2 %v924_v34 }
 0x19b   : > { %v926_v41 = vsel %vm559_vm0, %v918_v23, %v925_v38 }
 0x19c   : > { %1260 = vmatpush.msrb.mxu2 %v868_v37  ;;  %1288 = vmatpush.msrb.mxu3 %v926_v41 }
 0x19e   : > { %1289 = vmatpush.msrb.mxu3 %v870_v45 }
 0x1ea   : > { %v1119_v46 = vpop.xlane.xlu1 %1118 }
 0x1eb   : > { %1781 = vrcp.f32 %v1119_v46 }
 0x1ef   : > { %v1131_v47 = vpop.xlane.xlu2 %1130 }
 0x1f0   : > { %1783 = vrcp.f32 %v1131_v47 }
 0x1f1   : > { %v1782_v48 = vpop.eup %1781 }
 0x1f2   : > { %v1149_v49 = vmul.f32 %v1782_v48, %v1119_v46 }
 0x1f4   : > { %v1157_v51 = vsub.f32 2.0, %v1149_v49 }
 0x1f6   : > { %v1784_v52 = vpop.eup %1783  ;;  %v1165_v53 = vmul.f32 %v1782_v48, %v1157_v51 }
 0x1f7   : > { %v1153_v54 = vmul.f32 %v1784_v52, %v1131_v47  ;;  %v1125_v55 = vpop.xlane.xlu2 %1124  ;;  %v1137_v57 = vpop.xlane.xlu0 %1136 }
 0x1f8   : > { %v1173_v59 = vmul.f32 %v2136_v50, %v1165_v53  ;;  %1785 = vrcp.f32 %v1125_v55 }
 0x1f9   : > { %v1161_v60 = vsub.f32 2.0, %v1153_v54  ;;  %1787 = vrcp.f32 %v1137_v57 }
 0x1fa   : > { %1710 = vmatmul.msk.f32.vlgmr.msrb.gmra.mxu0 %vm1068_vm2, %v1173_v59 }
 0x1fb   : > { %v1169_v61 = vmul.f32 %v1784_v52, %v1161_v60 }
 0x1fd   : > { %v1177_v62 = vmul.f32 %v2140_v56, %v1169_v61 }
 0x1fe   : > { %v1786_v63 = vpop.eup %1785 }
 0x1ff   : > { %v1788_v2 = vpop.eup %1787  ;;  %v1151_v3 = vmul.f32 %v1786_v63, %v1125_v55  ;;  %1714 = vmatmul.msk.f32.vlgmr.msrb.gmra.mxu2 %vm1068_vm2, %v1177_v62  ;;  %v1122_v4 = vpop.xlane.xlu2 %1121 }
 0x200   : > { %v1134_v6 = vpop.xlane.xlu0 %1133  ;;  %v1155_v7 = vmul.f32 %v1788_v2, %v1137_v57  ;;  %v1140_v8 = vpop.xlane.xlu1 %1139  ;;  %1789 = vrcp.f32 %v1122_v4 }
 0x201   : > { %v1159_v9 = vsub.f32 2.0, %v1151_v3  ;;  %1791 = vrcp.f32 %v1140_v8 }
 0x202   : > { %v1163_v50 = vsub.f32 2.0, %v1155_v7  ;;  %1793 = vrcp.f32 %v1134_v6 }
 0x203   : > { %v1167_v10 = vmul.f32 %v1786_v63, %v1159_v9 }
 0x204   : > { %v1171_v11 = vmul.f32 %v1788_v2, %v1163_v50 }
 0x205   : > { %v1175_v15 = vmul.f32 %v2144_v0, %v1167_v10 }
 0x206   : > { %v1790_v16 = vpop.eup %1789  ;;  %v1179_v56 = vmul.f32 %v2146_v5, %v1171_v11 }
 0x207   : > { %v1792_v17 = vpop.eup %1791  ;;  %v1150_v19 = vmul.f32 %v1790_v16, %v1122_v4  ;;  %1712 = vmatmul.msk.f32.vlgmr.msrb.gmra.mxu1 %vm1068_vm2, %v1175_v15 }
 0x208   : > { %v1128_v20 = vpop.xlane.xlu0 %1127  ;;  %v1794_v21 = vpop.eup %1793  ;;  %v1156_v22 = vmul.f32 %v1792_v17, %v1140_v8  ;;  %1716 = vmatmul.msk.f32.vlgmr.msrb.gmra.mxu3 %vm1068_vm2, %v1179_v56 }
 0x209   : > { %1795 = vrcp.f32 %v1128_v20  ;;  %v1158_v23 = vsub.f32 2.0, %v1150_v19  ;;  %v1154_v24 = vmul.f32 %v1794_v21, %v1134_v6 }
 0x20a   : > { %v1164_v25 = vsub.f32 2.0, %v1156_v22 }
 0x20b   : > { %v1166_v26 = vmul.f32 %v1790_v16, %v1158_v23  ;;  %v1162_v27 = vsub.f32 2.0, %v1154_v24 }
 0x20c   : > { %v1172_v28 = vmul.f32 %v1792_v17, %v1164_v25 }
 0x20d   : > { %v1170_v0 = vmul.f32 %v1794_v21, %v1162_v27  ;;  %v1174_v29 = vmul.f32 %v2154_v13, %v1166_v26 }
 0x20e   : > { %v1180_v30 = vmul.f32 %v2156_v14, %v1172_v28 }
 0x20f   : > { %v1796_v5 = vpop.eup %1795  ;;  %1711 = vmatmul.msk.f32.gmra.mxu0 %vm1068_vm2, %v1174_v29  ;;  %v1178_v32 = vmul.f32 %v2152_v12, %v1170_v0 }
 0x210   : > { %v1152_v31 = vmul.f32 %v1796_v5, %v1128_v20  ;;  %1717 = vmatmul.msk.f32.gmra.mxu3 %vm1068_vm2, %v1180_v30 }
 0x211   : > { %1715 = vmatmul.msk.f32.gmra.mxu2 %vm1068_vm2, %v1178_v32 }
 0x212   : > { %v1160_v33 = vsub.f32 2.0, %v1152_v31 }
 0x214   : > { %v1168_v34 = vmul.f32 %v1796_v5, %v1160_v33 }
 0x216   : > { %v1176_v35 = vmul.f32 %v2164_v18, %v1168_v34 }
 0x218   : > { %1713 = vmatmul.msk.f32.gmra.mxu1 %vm1068_vm2, %v1176_v35 }
 0x277   : > { %v1204_v36 = vpop.f32.mrf.mxu0 }
 0x278   : > { %v1299_v37 = vrot.slane %v1204_v36, 4 }
 0x282   : > { %v1262_v13 = vpop.f32.mrf.mxu2 }
 0x283   : > { %v1297_v38 = vrot.slane %v1262_v13, 4  ;;  %v1300_v14 = vsel %vm559_vm0, %v1262_v13, %v1299_v37 }
 0x284   : > { %v1233_v40 = vpop.f32.mrf.mxu1  ;;  %v1308_v12 = vperm.slane %v1300_v14, %v1995_v58 }
 0x285   : > { %v1298_v41 = vsel %vm559_vm0, %v1297_v38, %v1204_v36  ;;  %v1311_v42 = vrot.slane %v1233_v40, 4 }
 0x286   : > { %v1304_v43 = vperm.slane %v1298_v41, %v1995_v58  ;;  %v1335_v39 = vrot.slane %v1308_v12, 4 }
 0x288   : > { %v1323_v48 = vrot.slane %v1304_v43, 4 }
 0x28b   : > { %v1291_v44 = vpop.f32.mrf.mxu3 }
 0x28c   : > { %v1309_v45 = vrot.slane %v1291_v44, 4  ;;  %v1312_v18 = vsel %vm559_vm0, %v1291_v44, %v1311_v42  ;;  %v1207_v54 = vpop.f32.mrf.mxu0 }
 0x28d   : > { %v1320_v46 = vperm.slane %v1312_v18, %v1995_v58  ;;  %v1355_v2 = vrot.slane %v1207_v54, 4 }
 0x28e   : > { %v1310_v47 = vsel %vm559_vm0, %v1309_v45, %v1233_v40 }
 0x28f   : > { %v1316_v49 = vperm.slane %v1310_v47, %v1995_v58  ;;  %v1333_v51 = vrot.slane %v1320_v46, 4  ;;  %v1336_v52 = vsel %vm559_vm0, %v1320_v46, %v1335_v39 }
 0x290   : > { %v1344_v53 = vperm.slane %v1336_v52, %v1999_v1 }
 0x291   : > { %v1321_v55 = vrot.slane %v1316_v49, 4  ;;  %v1324_v57 = vsel %vm559_vm0, %v1316_v49, %v1323_v48  ;;  %v1334_v59 = vsel %vm559_vm0, %v1333_v51, %v1308_v12 }
 0x292   : > { %v1332_v60 = vperm.slane %v1324_v57, %v1999_v1  ;;  %v1340_v61 = vperm.slane %v1334_v59, %v1999_v1  ;;  %1416 = vst.msk [vmem:[%s2258_s30 + $0x18] sm:$0xf] %vm1409_vm3, %v1344_v53  ;;  %v1351_v63 = vrot.slane %v1344_v53, 4 }
 0x293   : > { %v1322_v62 = vsel %vm559_vm0, %v1321_v55, %v1304_v43  ;;  %v1294_v3 = vpop.f32.mrf.mxu3 }
 0x294   : > { %v1328_v4 = vperm.slane %v1322_v62, %v1999_v1  ;;  %v1347_v6 = vrot.slane %v1332_v60, 4  ;;  %v1349_v7 = vrot.slane %v1340_v61, 4  ;;  %1412 = vst.msk [vmem:[%s2258_s30 + $0x8] sm:$0xf] %vm1409_vm3, %v1332_v60  ;;  %v1265_v8 = vpop.f32.mrf.mxu2  ;;  %v1365_v11 = vrot.slane %v1294_v3, 4 }
 0x295   : > { %v1236_v9 = vpop.f32.mrf.mxu1  ;;  %1414 = vst.msk [vmem:[%s2258_s30 + $0x10] sm:$0xf] %vm1409_vm3, %v1340_v61  ;;  %v1353_v50 = vrot.slane %v1265_v8, 4  ;;  %v1356_v10 = vsel %vm559_vm0, %v1265_v8, %v1355_v2  ;;  %v1352_v20 = vsel %vm559_vm0, 0.0, %v1351_v63 }
 0x296   : > { %v1367_v15 = vrot.slane %v1236_v9, 4  ;;  %v1345_v16 = vrot.slane %v1328_v4, 4  ;;  %v1348_v56 = vsel %vm559_vm0, 0.0, %v1347_v6  ;;  %v1350_v17 = vsel %vm559_vm0, 0.0, %v1349_v7  ;;  %1410 = vst.msk [vmem:[%s2258_s30] sm:$0xf] %vm1409_vm3, %v1328_v4 }
 0x297   : > { %v1364_v19 = vperm.slane %v1356_v10, %v1995_v58  ;;  %1413 = vst.msk [vmem:[%s2258_s30 + $0xc] sm:$0xf] %vm1409_vm3, %v1348_v56  ;;  %v1354_v21 = vsel %vm559_vm0, %v1353_v50, %v1207_v54  ;;  %v1366_v22 = vsel %vm559_vm0, %v1365_v11, %v1236_v9 }
 0x298   : > { %v1368_v23 = vsel %vm559_vm0, %v1294_v3, %v1367_v15  ;;  %v1346_v24 = vsel %vm559_vm0, 0.0, %v1345_v16  ;;  %1415 = vst.msk [vmem:[%s2258_s30 + $0x14] sm:$0xf] %vm1409_vm3, %v1350_v17  ;;  %v1360_v25 = vperm.slane %v1354_v21, %v1995_v58  ;;  %v1372_v26 = vperm.slane %v1366_v22, %v1995_v58 }
 0x299   : > { %1411 = vst.msk [vmem:[%s2258_s30 + $0x4] sm:$0xf] %vm1409_vm3, %v1346_v24  ;;  %v1391_v27 = vrot.slane %v1364_v19, 4  ;;  %v1376_v28 = vperm.slane %v1368_v23, %v1995_v58  ;;  %v1464_v46 = vld [vmem:[%s2258_s30 + $0x18] sm:$0xf] (%p1898_p6) }
 0x29a   : > { %1417 = vst.msk [vmem:[%s2258_s30 + $0x1c] sm:$0xf] %vm1409_vm3, %v1352_v20  ;;  %v1379_v0 = vrot.slane %v1360_v25, 4  ;;  %v1377_v29 = vrot.slane %v1372_v26, 4 }
 0x29b   : > { %v1389_v5 = vrot.slane %v1376_v28, 4  ;;  %v1392_v30 = vsel %vm559_vm0, %v1376_v28, %v1391_v27  ;;  %v1456_v44 = vld [vmem:[%s2258_s30 + $0x8] sm:$0xf] (%p1898_p6)  ;;  %1465 = vst [vmem:[%s1435_s7 + $0x30] sm:$0xf] (%p1898_p6), %v1464_v46 }
 0x29c   : > { %v1378_v31 = vsel %vm559_vm0, %v1377_v29, %v1360_v25  ;;  %v1380_v32 = vsel %vm559_vm0, %v1372_v26, %v1379_v0  ;;  %v1400_v33 = vperm.slane %v1392_v30, %v1999_v1  ;;  %v1460_v18 = vld [vmem:[%s2258_s30 + $0x10] sm:$0xf] (%p1898_p6)  ;;  %1457 = vst [vmem:[%s1435_s7 + $0x10] sm:$0xf] (%p1898_p6), %v1456_v44 }
 0x29d   : > { %v1384_v34 = vperm.slane %v1378_v31, %v1999_v1  ;;  %v1388_v58 = vperm.slane %v1380_v32, %v1999_v1  ;;  %v1390_v35 = vsel %vm559_vm0, %v1389_v5, %v1364_v19  ;;  %v1452_v42 = vld [vmem:[%s2258_s30] sm:$0xf] (%p1898_p6)  ;;  %1461 = vst [vmem:[%s1435_s7 + $0x20] sm:$0xf] (%p1898_p6), %v1460_v18 }
 0x29e   : > { %v1396_v36 = vperm.slane %v1390_v35, %v1999_v1  ;;  %v1407_v13 = vrot.slane %v1400_v33, 4  ;;  %1424 = vst.msk [vmem:[%s2258_s30 + $0x38] sm:$0xf] %vm1409_vm3, %v1400_v33  ;;  %v1458_v45 = vld [vmem:[%s2258_s30 + $0xc] sm:$0xf] (%p1898_p6) }
 0x29f   : > { %v1401_v37 = vrot.slane %v1384_v34, 4  ;;  %v1403_v38 = vrot.slane %v1388_v58, 4  ;;  %1418 = vst.msk [vmem:[%s2258_s30 + $0x20] sm:$0xf] %vm1409_vm3, %v1384_v34  ;;  %v1462_v39 = vld [vmem:[%s2258_s30 + $0x14] sm:$0xf] (%p1898_p6) }
 0x2a0   : > { %v1405_v14 = vrot.slane %v1396_v36, 4  ;;  %1420 = vst.msk [vmem:[%s2258_s30 + $0x28] sm:$0xf] %vm1409_vm3, %v1388_v58  ;;  %v1408_v1 = vsel %vm559_vm0, 0.0, %v1407_v13  ;;  %v1454_v43 = vld [vmem:[%s2258_s30 + $0x4] sm:$0xf] (%p1898_p6) }
 0x2a1   : > { %v1402_v40 = vsel %vm559_vm0, 0.0, %v1401_v37  ;;  %v1404_v41 = vsel %vm559_vm0, 0.0, %v1403_v38  ;;  %1422 = vst.msk [vmem:[%s2258_s30 + $0x30] sm:$0xf] %vm1409_vm3, %v1396_v36  ;;  %1432 = sbr.rel (!%p1898_p6) target bundleno = 691 (0x2b3), region = 159 }
 0x2a2   : > { %v1406_v12 = vsel %vm559_vm0, 0.0, %v1405_v14  ;;  %1419 = vst.msk [vmem:[%s2258_s30 + $0x24] sm:$0xf] %vm1409_vm3, %v1402_v40  ;;  %v1466_v47 = vld [vmem:[%s2258_s30 + $0x1c] sm:$0xf] (%p1898_p6) }
 0x2a3   : > { %1421 = vst.msk [vmem:[%s2258_s30 + $0x2c] sm:$0xf] %vm1409_vm3, %v1404_v41 }
 0x2a4   : > { %1423 = vst.msk [vmem:[%s2258_s30 + $0x34] sm:$0xf] %vm1409_vm3, %v1406_v12 }
 0x2a5   : > { %1425 = vst.msk [vmem:[%s2258_s30 + $0x3c] sm:$0xf] %vm1409_vm3, %v1408_v1  ;;  %v1480_v55 = vld [vmem:[%s2258_s30 + $0x38] sm:$0xf] (%p1898_p6) }
 0x2a6   : > { %1453 = vst [vmem:[%s1435_s7] sm:$0xf] %v1452_v42  ;;  %v1468_v48 = vld [vmem:[%s2258_s30 + $0x20] sm:$0xf] }
 0x2a7   : > { %1455 = vst [vmem:[%s1435_s7 + $0x8] sm:$0xf] %v1454_v43  ;;  %v1472_v51 = vld [vmem:[%s2258_s30 + $0x28] sm:$0xf] }
 0x2a8   : > { %1459 = vst [vmem:[%s1435_s7 + $0x18] sm:$0xf] %v1458_v45  ;;  %v1476_v53 = vld [vmem:[%s2258_s30 + $0x30] sm:$0xf] }
 0x2a9   : > { %1463 = vst [vmem:[%s1435_s7 + $0x28] sm:$0xf] %v1462_v39  ;;  %v1470_v49 = vld [vmem:[%s2258_s30 + $0x24] sm:$0xf] }
 0x2aa   : > { %1467 = vst [vmem:[%s1435_s7 + $0x38] sm:$0xf] %v1466_v47  ;;  %v1474_v52 = vld [vmem:[%s2258_s30 + $0x2c] sm:$0xf] }
 0x2ab   : > { %1469 = vst [vmem:[%s1435_s7 + $0x40] sm:$0xf] %v1468_v48  ;;  %v1478_v54 = vld [vmem:[%s2258_s30 + $0x34] sm:$0xf] }
 0x2ac   : > { %1471 = vst [vmem:[%s1435_s7 + $0x48] sm:$0xf] %v1470_v49  ;;  %v1482_v57 = vld [vmem:[%s2258_s30 + $0x3c] sm:$0xf] }
 0x2ad   : > { %1473 = vst [vmem:[%s1435_s7 + $0x50] sm:$0xf] %v1472_v51 }
 0x2ae   : > { %1475 = vst [vmem:[%s1435_s7 + $0x58] sm:$0xf] %v1474_v52 }
 0x2af   : > { %1477 = vst [vmem:[%s1435_s7 + $0x60] sm:$0xf] %v1476_v53 }
 0x2b0   : > { %1479 = vst [vmem:[%s1435_s7 + $0x68] sm:$0xf] %v1478_v54 }
 0x2b1   : > { %1481 = vst [vmem:[%s1435_s7 + $0x70] sm:$0xf] %v1480_v55 }
 0x2b2   : > { %1483 = vst [vmem:[%s1435_s7 + $0x78] sm:$0xf] %v1482_v57 }
 0x2b3 PF: > { %s13_s16 = sadd.s32 1, %s1835_s16   ;;  %s2361_s12 = smov %s1823_s13 }
 0x2b4   : > { %p10_p11 = scmp.ge.s32.totalorder %s13_s16, 4   ;;  %s2362_s13 = smov %s1903_s23 }
 0x2b5   : > { %s2363_s14 = smov %s1831_s15  ;;  %s2364_s15 = smov %s2366_s17 }
 0x2b6   :  { %12 = sbr.rel (!%p10_p11) target bundleno = 3 (0x3), region = 247 }

// kernel: pyt_multihead_attention_forward.5
= control target key start
LH: loop header
LB: loop body
LE: loop exit
PB: predicated region body
PF: predicated region fallthrough
CT: control target
= control target key end

     0   :  { %s288_s0 = inlined_call_operand.vmem [shape: f32[32,128], index: 0, kind: input, shape index: {}]   ;;  %s289_s1 = inlined_call_operand.vmem [shape: f32[128,128], index: 1, kind: input, shape index: {}]   ;;  %s290_s2 = inlined_call_operand.vmem [shape: f32[1,128], index: 2, kind: input, shape index: {}]   ;;  %s291_s3 = inlined_call_operand.hbm [shape: f32[32,128], index: 3, kind: output, shape index: {}]  }
   0x1   :  { %v46_v0 = vld [vmem:[%s289_s1 + $0x78] sm:$0xff]  ;;  %v45_v1 = vld [vmem:[%s289_s1 + $0x70] sm:$0xff]  ;;  %v44_v2 = vld [vmem:[%s289_s1 + $0x68] sm:$0xff] }
   0x2   :  { %122 = vmatpush.msra.mxu2 %v46_v0  ;;  %123 = vmatpush.msra.mxu3 %v46_v0  ;;  %v43_v3 = vld [vmem:[%s289_s1 + $0x60] sm:$0xff]  ;;  %v42_v4 = vld [vmem:[%s289_s1 + $0x58] sm:$0xff] }
   0x3   :  { %47 = vmatpush.msra.mxu0 %v46_v0  ;;  %121 = vmatpush.msra.mxu1 %v46_v0 }
   0x4   :  { %125 = vmatpush.msra.mxu2 %v45_v1  ;;  %126 = vmatpush.msra.mxu3 %v45_v1 }
   0x5   :  { %48 = vmatpush.msra.mxu0 %v45_v1  ;;  %124 = vmatpush.msra.mxu1 %v45_v1 }
   0x6   :  { %128 = vmatpush.msra.mxu2 %v44_v2  ;;  %129 = vmatpush.msra.mxu3 %v44_v2 }
   0x7   :  { %49 = vmatpush.msra.mxu0 %v44_v2  ;;  %127 = vmatpush.msra.mxu1 %v44_v2 }
   0x8   :  { %131 = vmatpush.msra.mxu2 %v43_v3  ;;  %132 = vmatpush.msra.mxu3 %v43_v3 }
   0x9   :  { %8 = vsyncpa [#allocation4], 0  ;;  %v41_v5 = vld [vmem:[%s289_s1 + $0x50] sm:$0xff]  ;;  %50 = vmatpush.msra.mxu0 %v43_v3  ;;  %130 = vmatpush.msra.mxu1 %v43_v3  ;;  %v40_v6 = vld [vmem:[%s289_s1 + $0x48] sm:$0xff]  ;;  %s199_s26 = smov [#allocation3]   ;;  %s201_s30 = smov 8  }
   0xa   :  { %134 = vmatpush.msra.mxu2 %v42_v4  ;;  %135 = vmatpush.msra.mxu3 %v42_v4  ;;  %v39_v7 = vld [vmem:[%s289_s1 + $0x40] sm:$0xff]  ;;  %v38_v8 = vld [vmem:[%s289_s1 + $0x38] sm:$0xff]  ;;  %v37_v9 = vld [vmem:[%s289_s1 + $0x30] sm:$0xff]  ;;  %s107_s27 = sshll.u32 %s199_s26, 4  ;;  %s108_s27 = int_to_ptr.vmem [resolvable:$true] %s107_s27 }
   0xb   :  { %51 = vmatpush.msra.mxu0 %v42_v4  ;;  %133 = vmatpush.msra.mxu1 %v42_v4  ;;  %v36_v10 = vld [vmem:[%s289_s1 + $0x28] sm:$0xff]  ;;  %v35_v11 = vld [vmem:[%s289_s1 + $0x20] sm:$0xff]  ;;  %v34_v12 = vld [vmem:[%s289_s1 + $0x18] sm:$0xff] }
   0xc   :  { %137 = vmatpush.msra.mxu2 %v41_v5  ;;  %138 = vmatpush.msra.mxu3 %v41_v5  ;;  %v33_v13 = vld [vmem:[%s289_s1 + $0x10] sm:$0xff]  ;;  %v32_v14 = vld [vmem:[%s289_s1 + $0x8] sm:$0xff]  ;;  %v31_v15 = vld [vmem:[%s289_s1] sm:$0xff] }
   0xd   :  { %52 = vmatpush.msra.mxu0 %v41_v5  ;;  %136 = vmatpush.msra.mxu1 %v41_v5  ;;  %v29_v16 = vld [vmem:[%s288_s0 + $0x10] sm:$0xff]  ;;  %v30_v17 = vld [vmem:[%s288_s0 + $0x18] sm:$0xff]  ;;  %v27_v18 = vld [vmem:[%s288_s0] sm:$0xff] }
   0xe   :  { %140 = vmatpush.msra.mxu2 %v40_v6  ;;  %141 = vmatpush.msra.mxu3 %v40_v6  ;;  %v28_v19 = vld [vmem:[%s288_s0 + $0x8] sm:$0xff]  ;;  %v172_v20 = vld [vmem:[%s290_s2] ss:$0 sm:$0xff]  ;;  %s109_s0 = sshll.u32 %s291_s3, 4  ;;  %s200_s2 = smov 128   ;;  %s110_s0 = int_to_ptr.hbm [resolvable:$true] %s109_s0 }
   0xf   :  { %53 = vmatpush.msra.mxu0 %v40_v6  ;;  %139 = vmatpush.msra.mxu1 %v40_v6 }
  0x10   :  { %143 = vmatpush.msra.mxu2 %v39_v7  ;;  %144 = vmatpush.msra.mxu3 %v39_v7 }
  0x11   :  { %54 = vmatpush.msra.mxu0 %v39_v7  ;;  %142 = vmatpush.msra.mxu1 %v39_v7 }
  0x12   :  { %146 = vmatpush.msra.mxu2 %v38_v8  ;;  %147 = vmatpush.msra.mxu3 %v38_v8 }
  0x13   :  { %55 = vmatpush.msra.mxu0 %v38_v8  ;;  %145 = vmatpush.msra.mxu1 %v38_v8 }
  0x14   :  { %149 = vmatpush.msra.mxu2 %v37_v9  ;;  %150 = vmatpush.msra.mxu3 %v37_v9 }
  0x15   :  { %56 = vmatpush.msra.mxu0 %v37_v9  ;;  %148 = vmatpush.msra.mxu1 %v37_v9 }
  0x16   :  { %152 = vmatpush.msra.mxu2 %v36_v10  ;;  %153 = vmatpush.msra.mxu3 %v36_v10 }
  0x17   :  { %57 = vmatpush.msra.mxu0 %v36_v10  ;;  %151 = vmatpush.msra.mxu1 %v36_v10 }
  0x18   :  { %155 = vmatpush.msra.mxu2 %v35_v11  ;;  %156 = vmatpush.msra.mxu3 %v35_v11 }
  0x19   :  { %58 = vmatpush.msra.mxu0 %v35_v11  ;;  %154 = vmatpush.msra.mxu1 %v35_v11 }
  0x1a   :  { %158 = vmatpush.msra.mxu2 %v34_v12  ;;  %159 = vmatpush.msra.mxu3 %v34_v12 }
  0x1b   :  { %59 = vmatpush.msra.mxu0 %v34_v12  ;;  %157 = vmatpush.msra.mxu1 %v34_v12 }
  0x1c   :  { %161 = vmatpush.msra.mxu2 %v33_v13  ;;  %162 = vmatpush.msra.mxu3 %v33_v13 }
  0x1d   :  { %60 = vmatpush.msra.mxu0 %v33_v13  ;;  %160 = vmatpush.msra.mxu1 %v33_v13 }
  0x1e   :  { %164 = vmatpush.msra.mxu2 %v32_v14  ;;  %165 = vmatpush.msra.mxu3 %v32_v14 }
  0x1f   :  { %61 = vmatpush.msra.mxu0 %v32_v14  ;;  %163 = vmatpush.msra.mxu1 %v32_v14 }
  0x20   :  { %167 = vmatpush.msra.mxu2 %v31_v15  ;;  %168 = vmatpush.msra.mxu3 %v31_v15 }
  0x21   :  { %69 = vmatmul.f32.vlgmr.msra.gmra.mxu2 %v29_v16  ;;  %72 = vmatmul.f32.vlgmr.msra.gmra.mxu3 %v30_v17 }
  0x22   :  { %62 = vmatpush.msra.mxu0 %v31_v15  ;;  %166 = vmatpush.msra.mxu1 %v31_v15 }
  0x23   :  { %63 = vmatmul.f32.vlgmr.msra.gmra.mxu0 %v27_v18  ;;  %66 = vmatmul.f32.vlgmr.msra.gmra.mxu1 %v28_v19 }
  0xa0   :  { %v64_v21 = vpop.f32.mrf.mxu0  ;;  %v67_v22 = vpop.f32.mrf.mxu1 }
  0xa1   :  { %v95_v23 = vadd.f32 %v172_v20, %v64_v21  ;;  %v96_v24 = vadd.f32 %v172_v20, %v67_v22 }
  0xa3   :  { %99 = vst [vmem:[#allocation3] sm:$0xff] %v95_v23 }
  0xa4   :  { %100 = vst [vmem:[#allocation3 + $0x8] sm:$0xff] %v96_v24  ;;  %v70_v25 = vpop.f32.mrf.mxu2  ;;  %v73_v26 = vpop.f32.mrf.mxu3 }
  0xa5   :  { %v97_v27 = vadd.f32 %v172_v20, %v70_v25  ;;  %v98_v28 = vadd.f32 %v172_v20, %v73_v26 }
  0xa7   :  { %101 = vst [vmem:[#allocation3 + $0x10] sm:$0xff] %v97_v27 }
  0xa8   :  { %102 = vst [vmem:[#allocation3 + $0x18] sm:$0xff] %v98_v28 }
  0xa9   :  { %115 = dma.vmem_to_hbm [thread:$0]  %s108_s27, 512, %s110_s0, [#allocation4], %s200_s2, %s200_s2, %s201_s30  }
  0xaa   :  { %197 = dma.done.wait [#allocation4], 512  }
  0xab   :  { %198 = vsyncadd [#allocation4], 4294966784 }
  0xac   :  { %120 = vsyncpa [#allocation4], 1 }

</bundles_post_ra>
